<compile_context>
chip_gen: v5e
topology: v5e:2x2
jax: 0.10.0
libtpu: 0.0.40
codegen_flags: <defaults>
</compile_context>

<pallas_src>
import functools

import jax
import jax.numpy as jnp
from jax import lax
from jax.experimental import pallas as pl
from jax.experimental.pallas import tpu as pltpu


def _round_up(x, m):
    return (x + m - 1) // m * m


def _cdiv(a, b):
    return -(-a // b)


def _pad_gate_cols(w, h, hp):
    """Pad the trailing gate axis from 3*h to 3*hp (zero-pad each gate slot)."""
    lead = w.shape[:-1]
    w3 = w.reshape(lead + (3, h))
    w3 = jnp.pad(w3, [(0, 0)] * len(lead) + [(0, 0), (0, hp - h)])
    return w3.reshape(lead + (3 * hp,))


def _gru_kernel(gi_ref, whh_ref, bhn_ref, h_ref, *,
                t_chunk, last_valid, hp, unroll):
    """One (batch_block, time_chunk) grid cell of the GRU recurrence.

    gi_ref : (t_chunk, Bblk, 3*Hp) f32  precomputed x@W_ih^T + b_ih + [b_hr,b_hz,0]
    whh_ref: (Hp, 3*Hp) bf16            recurrent weight, transposed
    bhn_ref: (1, Hp) f32                n-gate recurrent bias (must stay inside r*(.))
    h_ref  : (Bblk, Hp) f32             output block; constant index over the time
                                        axis keeps it resident in VMEM, so it is
                                        also the hidden-state carry (no scratch).
    """
    c = pl.program_id(1)

    @pl.when(c == 0)
    def _init():
        h_ref[...] = jnp.zeros_like(h_ref)

    bhn = bhn_ref[...]          # (1, Hp), hoisted out of the unrolled loop
    h0 = h_ref[...]

    def step(i, h):
        gi = gi_ref[i]                                        # (Bblk, 3Hp) f32
        # NOTE: whh_ref[...] intentionally stays inside the step: the MXU reads
        # the RHS from VMEM on every vmatmul regardless; hoisting it would make
        # a (Hp,3Hp) live value that cannot fit in vregs and would spill.
        gh = jnp.dot(h.astype(whh_ref.dtype), whh_ref[...],
                     preferred_element_type=jnp.float32)      # (Bblk, 3Hp) f32
        i_r, i_z, i_n = gi[:, :hp], gi[:, hp:2 * hp], gi[:, 2 * hp:]
        h_r, h_z, h_n = gh[:, :hp], gh[:, hp:2 * hp], gh[:, 2 * hp:]
        r = jax.nn.sigmoid(i_r + h_r)          # b_ir + b_hr already folded in i_r
        z = jax.nn.sigmoid(i_z + h_z)          # b_iz + b_hz already folded in i_z
        n = jnp.tanh(i_n + r * (h_n + bhn))    # b_hn must stay inside r*(...)
        return (1.0 - z) * n + z * h

    def run(n_steps):
        u = max(1, min(unroll, n_steps))
        return lax.fori_loop(0, n_steps, step, h0, unroll=u)

    if last_valid == t_chunk:
        h_ref[...] = run(t_chunk)
    else:
        # Only the last time chunk contains zero-padded timesteps; run a shorter
        # static-trip-count loop there instead of a per-step mask.
        n_last = pl.num_programs(1) - 1

        @pl.when(c != n_last)
        def _full():
            h_ref[...] = run(t_chunk)

        @pl.when(c == n_last)
        def _tail():
            h_ref[...] = run(last_valid)


def gru_final_hidden(gi, whh, bhn, *, seq_len, t_chunk, b_block):
    """gi: (seq_pad, batch_p, 3*Hp) f32. Returns final hidden (batch_p, Hp) f32."""
    seq_pad, batch_p, three_hp = gi.shape
    hp = three_hp // 3
    num_chunks = seq_pad // t_chunk
    num_bblocks = batch_p // b_block
    last_valid = seq_len - (num_chunks - 1) * t_chunk

    kernel = functools.partial(
        _gru_kernel, t_chunk=t_chunk, last_valid=last_valid, hp=hp, unroll=8)

    return pl.pallas_call(
        kernel,
        out_shape=jax.ShapeDtypeStruct((batch_p, hp), jnp.float32),
        grid_spec=pltpu.PrefetchScalarGridSpec(
            num_scalar_prefetch=0,
            grid=(num_bblocks, num_chunks),
            in_specs=[
                # gi: streamed per (batch block, time chunk); double-buffered so
                # the next chunk's DMA hides behind the recurrence.
                pl.BlockSpec((t_chunk, b_block, three_hp), lambda b, c: (c, b, 0)),
                # Grid-invariant recurrent weight / n-gate bias (DMA'd once).
                # NOTE(v7x, very large Hp): pipeline_mode=pl.Buffered(1) would
                # halve this block's VMEM; not needed at Hp<=512.
                pl.BlockSpec((hp, three_hp), lambda b, c: (0, 0)),
                pl.BlockSpec((1, hp), lambda b, c: (0, 0)),
            ],
            # Constant index over the time axis -> block stays resident in VMEM
            # and doubles as the hidden-state carry.
            out_specs=pl.BlockSpec((b_block, hp), lambda b, c: (b, 0)),
        ),
        compiler_params=pltpu.CompilerParams(
            # Batch blocks are independent (megacore-shardable on v7x); the time
            # axis is the serial recurrence.
            dimension_semantics=("parallel", "arbitrary")),
    )(gi, whh, bhn)


class EncoderPallas:
    """JAX/Pallas port of the PyTorch Encoder module (forward pass, eval mode)."""

    def __init__(self, input_dim, embedding_dim, hidden_dim, dropout, key,
                 t_chunk=64, recurrent_dtype=jnp.bfloat16):
        self.hidden_dim = hidden_dim
        self.t_chunk = t_chunk
        H = hidden_dim
        self.hp = max(_round_up(H, 128), 128)
        Hp = self.hp

        k_emb, k_wih, k_whh, k_bih, k_bhh = jax.random.split(key, 5)
        bound = 1.0 / float(hidden_dim) ** 0.5
        # nn.Embedding default init: N(0, 1).
        self.embedding = jax.random.normal(
            k_emb, (input_dim, embedding_dim), jnp.float32)
        # nn.GRU default init: U(-1/sqrt(H), 1/sqrt(H)); stored pre-transposed,
        # gate order (r, z, n).
        self.w_ih_t = jax.random.uniform(
            k_wih, (embedding_dim, 3 * H), jnp.float32, -bound, bound)
        self.w_hh_t = jax.random.uniform(
            k_whh, (H, 3 * H), jnp.float32, -bound, bound)
        self.b_ih = jax.random.uniform(
            k_bih, (1, 3 * H), jnp.float32, -bound, bound)
        self.b_hh = jax.random.uniform(
            k_bhh, (1, 3 * H), jnp.float32, -bound, bound)
        self.dropout_p = dropout  # identity in eval mode

        # --- Kernel-side parameter prep -----------------------------------
        # Fold b_hr / b_hz into the input-side bias (they sit outside the
        # r*(...) term, so this is exact); b_hn must stay inside the kernel.
        b_in_fold = self.b_ih.at[:, :2 * H].add(self.b_hh[:, :2 * H])   # (1, 3H)
        w_ih_t_p = _pad_gate_cols(self.w_ih_t, H, Hp)                   # (emb, 3Hp)
        b_in_fold_p = _pad_gate_cols(b_in_fold, H, Hp)                  # (1, 3Hp)
        # Fused embedding + input projection table: gi = take(proj_table, src).
        # NOTE(synk): table is vocab*3Hp*4 B (~48 MB at vocab=7853, H=512) in HBM.
        self.proj_table = self.embedding @ w_ih_t_p + b_in_fold_p       # (vocab, 3Hp) f32

        whh_p = _pad_gate_cols(self.w_hh_t, H, Hp)                      # (H, 3Hp)
        whh_p = jnp.pad(whh_p, ((0, Hp - H), (0, 0)))                   # (Hp, 3Hp)
        # bf16 MXU operand; error vs f32 grows with seq_len — pass
        # recurrent_dtype=jnp.float32 if exact long-sequence parity is needed.
        self.w_hh_t_p = whh_p.astype(recurrent_dtype)
        self.b_hn_p = jnp.pad(self.b_hh[:, 2 * H:], ((0, 0), (0, Hp - H)))  # (1, Hp)

    def __call__(self, src):
        # src: (seq_len, batch) int32
        seq_len, batch = src.shape
        H, Hp = self.hidden_dim, self.hp
        if seq_len == 0:
            # Empty sequence: PyTorch GRU's hidden stays at its zero init.
            return jnp.zeros((1, batch, H), jnp.float32)

        t_chunk = min(self.t_chunk, seq_len)
        seq_pad = _round_up(seq_len, t_chunk)

        # Batch padded to 16 sublanes (bf16 LHS vreg packing). Split into
        # multiple "parallel" batch blocks only when a multi-core TC is
        # detectable (v7x megacore); on 1-TC chips it stays a single block.
        batch_p = _round_up(batch, 16)
        try:
            n_cores = int(getattr(jax.devices()[0], "num_cores", 1) or 1)
        except Exception:
            n_cores = 1
        n_bblocks = 1
        if n_cores > 1 and batch_p >= 32:
            n_bblocks = max(1, min(n_cores, batch_p // 16))
        b_block = _round_up(_cdiv(batch_p, n_bblocks), 16)
        n_bblocks = _cdiv(batch_p, b_block)
        batch_p = b_block * n_bblocks

        # Pad the tiny int32 src BEFORE the gather (token 0 is a valid index;
        # padded timesteps are never executed, padded batch rows are sliced off)
        # so gi is produced already padded — no post-hoc full copy of gi.
        src_p = jnp.pad(src.astype(jnp.int32),
                        ((0, seq_pad - seq_len), (0, batch_p - batch)))

        # Fused embedding lookup + input projection + folded biases: one gather.
        # nn.Dropout is identity in eval mode. TODO(synk): training-mode dropout.
        gi = jnp.take(self.proj_table, src_p, axis=0)   # (seq_pad, batch_p, 3Hp) f32

        h_final = gru_final_hidden(gi, self.w_hh_t_p, self.b_hn_p,
                                   seq_len=seq_len, t_chunk=t_chunk,
                                   b_block=b_block)
        # Strip padding; PyTorch GRU returns hidden as (num_layers=1, batch, H).
        return h_final[:batch, :H][None, :, :]


if __name__ == "__main__":
    key = jax.random.PRNGKey(0)
    k_params, k_src, k_src2 = jax.random.split(key, 3)

    # Small shapes consistent with the module's forward.
    input_dim = 128       # vocab size (module default 7853; small for the test)
    embedding_dim = 16
    hidden_dim = 32
    seq_len = 8
    batch = 2

    def ref_forward(enc, src):
        """Pure-JAX reference with the same numerics (f32 input projection,
        recurrent matmul in the kernel's recurrent dtype with f32 accumulation)."""
        emb = jnp.take(enc.embedding, src, axis=0)
        H = enc.hidden_dim
        b = src.shape[1]
        whh = enc.w_hh_t.astype(enc.w_hh_t_p.dtype)

        def step(h, x):
            gi = x @ enc.w_ih_t + enc.b_ih[0]
            gh = jnp.dot(h.astype(whh.dtype), whh,
                         preferred_element_type=jnp.float32) + enc.b_hh[0]
            r = jax.nn.sigmoid(gi[:, :H] + gh[:, :H])
            z = jax.nn.sigmoid(gi[:, H:2 * H] + gh[:, H:2 * H])
            n = jnp.tanh(gi[:, 2 * H:] + r * gh[:, 2 * H:])
            return (1.0 - z) * n + z * h, None

        h0 = jnp.zeros((b, H), jnp.float32)
        h_last, _ = lax.scan(step, h0, emb)
        return h_last[None]

    # --- Test 1: seq divisible by the chunk (single chunk path) -------------
    enc = EncoderPallas(input_dim, embedding_dim, hidden_dim, dropout=0.5,
                        key=k_params)
    src = jax.random.randint(k_src, (seq_len, batch), 0, input_dim, jnp.int32)
    hidden = jax.block_until_ready(enc(src))
    assert hidden.shape == (1, batch, hidden_dim), hidden.shape
    assert hidden.dtype == jnp.float32
    ref = ref_forward(enc, src)
    err = float(jnp.max(jnp.abs(hidden - ref)))
    assert jnp.allclose(hidden, ref, atol=1e-3, rtol=1e-3), err

    # --- Test 2: multiple chunks + ragged tail chunk -------------------------
    enc2 = EncoderPallas(input_dim, embedding_dim, hidden_dim, dropout=0.0,
                         key=k_params, t_chunk=4)
    src2 = jax.random.randint(k_src2, (10, 3), 0, input_dim, jnp.int32)
    hidden2 = jax.block_until_ready(enc2(src2))
    assert hidden2.shape == (1, 3, hidden_dim), hidden2.shape
    ref2 = ref_forward(enc2, src2)
    err2 = float(jnp.max(jnp.abs(hidden2 - ref2)))
    assert jnp.allclose(hidden2, ref2, atol=1e-3, rtol=1e-3), err2

    print("KERNEL_OK")
</pallas_src>

<mosaic_0001>
module attributes {stable_mosaic.version = 11 : i64} {
  func.func @_gru_kernel(%arg0: i32, %arg1: i32, %arg2: memref<8x16x384xf32, #tpu.memory_space<vmem>>, %arg3: memref<128x384xbf16, #tpu.memory_space<vmem>>, %arg4: memref<1x128xf32, #tpu.memory_space<vmem>>, %arg5: memref<16x128xf32, #tpu.memory_space<vmem>>) attributes {dimension_semantics = [#tpu.dimension_semantics<parallel>, #tpu.dimension_semantics<arbitrary>], iteration_bounds = array<i64: 1, 1>, scalar_prefetch = 0 : i64, scratch_operands = 0 : i64, tpu.core_type = #tpu.core_type<tc>, window_params = [{transform_indices = @transform_0, window_bounds = array<i64: 8, 16, 384>}, {pipeline_mode = #tpu.pipeline_mode<synchronous>, transform_indices = @transform_1, window_bounds = array<i64: 128, 384>}, {pipeline_mode = #tpu.pipeline_mode<synchronous>, transform_indices = @transform_2, window_bounds = array<i64: 1, 128>}, {transform_indices = @transform_3, window_bounds = array<i64: 16, 128>}]} {
    %c0_i32 = arith.constant 0 : i32
    %0 = arith.cmpi eq, %arg1, %c0_i32 : i32
    %1 = arith.extui %0 : i1 to i32
    %c0_i32_0 = arith.constant 0 : i32
    %2 = arith.cmpi ne, %1, %c0_i32_0 : i32
    scf.if %2 {
      %cst_70 = arith.constant 0.000000e+00 : f32
      %278 = vector.broadcast %cst_70 : f32 to vector<16x128xf32>
      %c0_71 = arith.constant 0 : index
      %c0_72 = arith.constant 0 : index
      %279 = vector.load %arg5[%c0_71, %c0_72] : memref<16x128xf32, #tpu.memory_space<vmem>>, vector<16x128xf32>
      tpu.vector_store %arg5[%c0_71, %c0_72], %278 {strides = array<i32>} : memref<16x128xf32, #tpu.memory_space<vmem>>, vector<16x128xf32>,
    } else {
    }
    %c0 = arith.constant 0 : index
    %c0_1 = arith.constant 0 : index
    %3 = vector.load %arg4[%c0, %c0_1] : memref<1x128xf32, #tpu.memory_space<vmem>>, vector<1x128xf32>
    %c0_2 = arith.constant 0 : index
    %c0_3 = arith.constant 0 : index
    %4 = vector.load %arg5[%c0_2, %c0_3] : memref<16x128xf32, #tpu.memory_space<vmem>>, vector<16x128xf32>
    %c0_i32_4 = arith.constant 0 : i32
    %5 = arith.index_cast %c0_i32_4 : i32 to index
    %c0_5 = arith.constant 0 : index
    %c0_6 = arith.constant 0 : index
    %6 = vector.load %arg2[%5, %c0_5, %c0_6] : memref<8x16x384xf32, #tpu.memory_space<vmem>>, vector<1x16x384xf32>
    %7 = vector.shape_cast %6 : vector<1x16x384xf32> to vector<16x384xf32>
    %8 = arith.truncf %4 : vector<16x128xf32> to vector<16x128xbf16>
    %c0_7 = arith.constant 0 : index
    %c0_8 = arith.constant 0 : index
    %9 = vector.load %arg3[%c0_7, %c0_8] : memref<128x384xbf16, #tpu.memory_space<vmem>>, vector<128x384xbf16>
    %cst = arith.constant dense<0.000000e+00> : vector<16x384xf32>
    %10 = tpu.matmul %8, %9, %cst {dimension_numbers = #tpu.dot_dimension_numbers<[1], [0], [0], [1], [0, 0, 1, 1], [], []>} : vector<16x128xbf16>, vector<128x384xbf16>, vector<16x384xf32> -> vector<16x384xf32>
    %11 = vector.extract_strided_slice %7 {offsets = [0, 0], sizes = [16, 128], strides = [1, 1]} : vector<16x384xf32> to vector<16x128xf32>
    %12 = vector.extract_strided_slice %7 {offsets = [0, 128], sizes = [16, 128], strides = [1, 1]} : vector<16x384xf32> to vector<16x128xf32>
    %13 = vector.extract_strided_slice %7 {offsets = [0, 256], sizes = [16, 128], strides = [1, 1]} : vector<16x384xf32> to vector<16x128xf32>
    %14 = vector.extract_strided_slice %10 {offsets = [0, 0], sizes = [16, 128], strides = [1, 1]} : vector<16x384xf32> to vector<16x128xf32>
    %15 = vector.extract_strided_slice %10 {offsets = [0, 128], sizes = [16, 128], strides = [1, 1]} : vector<16x384xf32> to vector<16x128xf32>
    %16 = vector.extract_strided_slice %10 {offsets = [0, 256], sizes = [16, 128], strides = [1, 1]} : vector<16x384xf32> to vector<16x128xf32>
    %17 = arith.addf %11, %14 : vector<16x128xf32>
    %18 = arith.negf %17 : vector<16x128xf32>
    %19 = math.exp %18 : vector<16x128xf32>
    %cst_9 = arith.constant 1.000000e+00 : f32
    %20 = vector.broadcast %cst_9 : f32 to vector<16x128xf32>
    %21 = arith.addf %20, %19 : vector<16x128xf32>
    %22 = arith.divf %20, %21 : vector<16x128xf32>
    %23 = arith.addf %12, %15 : vector<16x128xf32>
    %24 = arith.negf %23 : vector<16x128xf32>
    %25 = math.exp %24 : vector<16x128xf32>
    %cst_10 = arith.constant 1.000000e+00 : f32
    %26 = vector.broadcast %cst_10 : f32 to vector<16x128xf32>
    %27 = arith.addf %26, %25 : vector<16x128xf32>
    %28 = arith.divf %26, %27 : vector<16x128xf32>
    %29 = vector.broadcast %3 : vector<1x128xf32> to vector<16x128xf32>
    %30 = arith.addf %16, %29 : vector<16x128xf32>
    %31 = arith.mulf %22, %30 : vector<16x128xf32>
    %32 = arith.addf %13, %31 : vector<16x128xf32>
    %33 = math.tanh %32 : vector<16x128xf32>
    %cst_11 = arith.constant 1.000000e+00 : f32
    %34 = vector.broadcast %cst_11 : f32 to vector<16x128xf32>
    %35 = arith.subf %34, %28 : vector<16x128xf32>
    %36 = arith.mulf %35, %33 : vector<16x128xf32>
    %37 = arith.mulf %28, %4 : vector<16x128xf32>
    %38 = arith.addf %36, %37 : vector<16x128xf32>
    %c1_i32 = arith.constant 1 : i32
    %39 = arith.index_cast %c1_i32 : i32 to index
    %c0_12 = arith.constant 0 : index
    %c0_13 = arith.constant 0 : index
    %40 = vector.load %arg2[%39, %c0_12, %c0_13] : memref<8x16x384xf32, #tpu.memory_space<vmem>>, vector<1x16x384xf32>
    %41 = vector.shape_cast %40 : vector<1x16x384xf32> to vector<16x384xf32>
    %42 = arith.truncf %38 : vector<16x128xf32> to vector<16x128xbf16>
    %c0_14 = arith.constant 0 : index
    %c0_15 = arith.constant 0 : index
    %43 = vector.load %arg3[%c0_14, %c0_15] : memref<128x384xbf16, #tpu.memory_space<vmem>>, vector<128x384xbf16>
    %cst_16 = arith.constant dense<0.000000e+00> : vector<16x384xf32>
    %44 = tpu.matmul %42, %43, %cst_16 {dimension_numbers = #tpu.dot_dimension_numbers<[1], [0], [0], [1], [0, 0, 1, 1], [], []>} : vector<16x128xbf16>, vector<128x384xbf16>, vector<16x384xf32> -> vector<16x384xf32>
    %45 = vector.extract_strided_slice %41 {offsets = [0, 0], sizes = [16, 128], strides = [1, 1]} : vector<16x384xf32> to vector<16x128xf32>
    %46 = vector.extract_strided_slice %41 {offsets = [0, 128], sizes = [16, 128], strides = [1, 1]} : vector<16x384xf32> to vector<16x128xf32>
    %47 = vector.extract_strided_slice %41 {offsets = [0, 256], sizes = [16, 128], strides = [1, 1]} : vector<16x384xf32> to vector<16x128xf32>
    %48 = vector.extract_strided_slice %44 {offsets = [0, 0], sizes = [16, 128], strides = [1, 1]} : vector<16x384xf32> to vector<16x128xf32>
    %49 = vector.extract_strided_slice %44 {offsets = [0, 128], sizes = [16, 128], strides = [1, 1]} : vector<16x384xf32> to vector<16x128xf32>
    %50 = vector.extract_strided_slice %44 {offsets = [0, 256], sizes = [16, 128], strides = [1, 1]} : vector<16x384xf32> to vector<16x128xf32>
    %51 = arith.addf %45, %48 : vector<16x128xf32>
    %52 = arith.negf %51 : vector<16x128xf32>
    %53 = math.exp %52 : vector<16x128xf32>
    %cst_17 = arith.constant 1.000000e+00 : f32
    %54 = vector.broadcast %cst_17 : f32 to vector<16x128xf32>
    %55 = arith.addf %54, %53 : vector<16x128xf32>
    %56 = arith.divf %54, %55 : vector<16x128xf32>
    %57 = arith.addf %46, %49 : vector<16x128xf32>
    %58 = arith.negf %57 : vector<16x128xf32>
    %59 = math.exp %58 : vector<16x128xf32>
    %cst_18 = arith.constant 1.000000e+00 : f32
    %60 = vector.broadcast %cst_18 : f32 to vector<16x128xf32>
    %61 = arith.addf %60, %59 : vector<16x128xf32>
    %62 = arith.divf %60, %61 : vector<16x128xf32>
    %63 = vector.broadcast %3 : vector<1x128xf32> to vector<16x128xf32>
    %64 = arith.addf %50, %63 : vector<16x128xf32>
    %65 = arith.mulf %56, %64 : vector<16x128xf32>
    %66 = arith.addf %47, %65 : vector<16x128xf32>
    %67 = math.tanh %66 : vector<16x128xf32>
    %cst_19 = arith.constant 1.000000e+00 : f32
    %68 = vector.broadcast %cst_19 : f32 to vector<16x128xf32>
    %69 = arith.subf %68, %62 : vector<16x128xf32>
    %70 = arith.mulf %69, %67 : vector<16x128xf32>
    %71 = arith.mulf %62, %38 : vector<16x128xf32>
    %72 = arith.addf %70, %71 : vector<16x128xf32>
    %c2_i32 = arith.constant 2 : i32
    %73 = arith.index_cast %c2_i32 : i32 to index
    %c0_20 = arith.constant 0 : index
    %c0_21 = arith.constant 0 : index
    %74 = vector.load %arg2[%73, %c0_20, %c0_21] : memref<8x16x384xf32, #tpu.memory_space<vmem>>, vector<1x16x384xf32>
    %75 = vector.shape_cast %74 : vector<1x16x384xf32> to vector<16x384xf32>
    %76 = arith.truncf %72 : vector<16x128xf32> to vector<16x128xbf16>
    %c0_22 = arith.constant 0 : index
    %c0_23 = arith.constant 0 : index
    %77 = vector.load %arg3[%c0_22, %c0_23] : memref<128x384xbf16, #tpu.memory_space<vmem>>, vector<128x384xbf16>
    %cst_24 = arith.constant dense<0.000000e+00> : vector<16x384xf32>
    %78 = tpu.matmul %76, %77, %cst_24 {dimension_numbers = #tpu.dot_dimension_numbers<[1], [0], [0], [1], [0, 0, 1, 1], [], []>} : vector<16x128xbf16>, vector<128x384xbf16>, vector<16x384xf32> -> vector<16x384xf32>
    %79 = vector.extract_strided_slice %75 {offsets = [0, 0], sizes = [16, 128], strides = [1, 1]} : vector<16x384xf32> to vector<16x128xf32>
    %80 = vector.extract_strided_slice %75 {offsets = [0, 128], sizes = [16, 128], strides = [1, 1]} : vector<16x384xf32> to vector<16x128xf32>
    %81 = vector.extract_strided_slice %75 {offsets = [0, 256], sizes = [16, 128], strides = [1, 1]} : vector<16x384xf32> to vector<16x128xf32>
    %82 = vector.extract_strided_slice %78 {offsets = [0, 0], sizes = [16, 128], strides = [1, 1]} : vector<16x384xf32> to vector<16x128xf32>
    %83 = vector.extract_strided_slice %78 {offsets = [0, 128], sizes = [16, 128], strides = [1, 1]} : vector<16x384xf32> to vector<16x128xf32>
    %84 = vector.extract_strided_slice %78 {offsets = [0, 256], sizes = [16, 128], strides = [1, 1]} : vector<16x384xf32> to vector<16x128xf32>
    %85 = arith.addf %79, %82 : vector<16x128xf32>
    %86 = arith.negf %85 : vector<16x128xf32>
    %87 = math.exp %86 : vector<16x128xf32>
    %cst_25 = arith.constant 1.000000e+00 : f32
    %88 = vector.broadcast %cst_25 : f32 to vector<16x128xf32>
    %89 = arith.addf %88, %87 : vector<16x128xf32>
    %90 = arith.divf %88, %89 : vector<16x128xf32>
    %91 = arith.addf %80, %83 : vector<16x128xf32>
    %92 = arith.negf %91 : vector<16x128xf32>
    %93 = math.exp %92 : vector<16x128xf32>
    %cst_26 = arith.constant 1.000000e+00 : f32
    %94 = vector.broadcast %cst_26 : f32 to vector<16x128xf32>
    %95 = arith.addf %94, %93 : vector<16x128xf32>
    %96 = arith.divf %94, %95 : vector<16x128xf32>
    %97 = vector.broadcast %3 : vector<1x128xf32> to vector<16x128xf32>
    %98 = arith.addf %84, %97 : vector<16x128xf32>
    %99 = arith.mulf %90, %98 : vector<16x128xf32>
    %100 = arith.addf %81, %99 : vector<16x128xf32>
    %101 = math.tanh %100 : vector<16x128xf32>
    %cst_27 = arith.constant 1.000000e+00 : f32
    %102 = vector.broadcast %cst_27 : f32 to vector<16x128xf32>
    %103 = arith.subf %102, %96 : vector<16x128xf32>
    %104 = arith.mulf %103, %101 : vector<16x128xf32>
    %105 = arith.mulf %96, %72 : vector<16x128xf32>
    %106 = arith.addf %104, %105 : vector<16x128xf32>
    %c3_i32 = arith.constant 3 : i32
    %107 = arith.index_cast %c3_i32 : i32 to index
    %c0_28 = arith.constant 0 : index
    %c0_29 = arith.constant 0 : index
    %108 = vector.load %arg2[%107, %c0_28, %c0_29] : memref<8x16x384xf32, #tpu.memory_space<vmem>>, vector<1x16x384xf32>
    %109 = vector.shape_cast %108 : vector<1x16x384xf32> to vector<16x384xf32>
    %110 = arith.truncf %106 : vector<16x128xf32> to vector<16x128xbf16>
    %c0_30 = arith.constant 0 : index
    %c0_31 = arith.constant 0 : index
    %111 = vector.load %arg3[%c0_30, %c0_31] : memref<128x384xbf16, #tpu.memory_space<vmem>>, vector<128x384xbf16>
    %cst_32 = arith.constant dense<0.000000e+00> : vector<16x384xf32>
    %112 = tpu.matmul %110, %111, %cst_32 {dimension_numbers = #tpu.dot_dimension_numbers<[1], [0], [0], [1], [0, 0, 1, 1], [], []>} : vector<16x128xbf16>, vector<128x384xbf16>, vector<16x384xf32> -> vector<16x384xf32>
    %113 = vector.extract_strided_slice %109 {offsets = [0, 0], sizes = [16, 128], strides = [1, 1]} : vector<16x384xf32> to vector<16x128xf32>
    %114 = vector.extract_strided_slice %109 {offsets = [0, 128], sizes = [16, 128], strides = [1, 1]} : vector<16x384xf32> to vector<16x128xf32>
    %115 = vector.extract_strided_slice %109 {offsets = [0, 256], sizes = [16, 128], strides = [1, 1]} : vector<16x384xf32> to vector<16x128xf32>
    %116 = vector.extract_strided_slice %112 {offsets = [0, 0], sizes = [16, 128], strides = [1, 1]} : vector<16x384xf32> to vector<16x128xf32>
    %117 = vector.extract_strided_slice %112 {offsets = [0, 128], sizes = [16, 128], strides = [1, 1]} : vector<16x384xf32> to vector<16x128xf32>
    %118 = vector.extract_strided_slice %112 {offsets = [0, 256], sizes = [16, 128], strides = [1, 1]} : vector<16x384xf32> to vector<16x128xf32>
    %119 = arith.addf %113, %116 : vector<16x128xf32>
    %120 = arith.negf %119 : vector<16x128xf32>
    %121 = math.exp %120 : vector<16x128xf32>
    %cst_33 = arith.constant 1.000000e+00 : f32
    %122 = vector.broadcast %cst_33 : f32 to vector<16x128xf32>
    %123 = arith.addf %122, %121 : vector<16x128xf32>
    %124 = arith.divf %122, %123 : vector<16x128xf32>
    %125 = arith.addf %114, %117 : vector<16x128xf32>
    %126 = arith.negf %125 : vector<16x128xf32>
    %127 = math.exp %126 : vector<16x128xf32>
    %cst_34 = arith.constant 1.000000e+00 : f32
    %128 = vector.broadcast %cst_34 : f32 to vector<16x128xf32>
    %129 = arith.addf %128, %127 : vector<16x128xf32>
    %130 = arith.divf %128, %129 : vector<16x128xf32>
    %131 = vector.broadcast %3 : vector<1x128xf32> to vector<16x128xf32>
    %132 = arith.addf %118, %131 : vector<16x128xf32>
    %133 = arith.mulf %124, %132 : vector<16x128xf32>
    %134 = arith.addf %115, %133 : vector<16x128xf32>
    %135 = math.tanh %134 : vector<16x128xf32>
    %cst_35 = arith.constant 1.000000e+00 : f32
    %136 = vector.broadcast %cst_35 : f32 to vector<16x128xf32>
    %137 = arith.subf %136, %130 : vector<16x128xf32>
    %138 = arith.mulf %137, %135 : vector<16x128xf32>
    %139 = arith.mulf %130, %106 : vector<16x128xf32>
    %140 = arith.addf %138, %139 : vector<16x128xf32>
    %c4_i32 = arith.constant 4 : i32
    %141 = arith.index_cast %c4_i32 : i32 to index
    %c0_36 = arith.constant 0 : index
    %c0_37 = arith.constant 0 : index
    %142 = vector.load %arg2[%141, %c0_36, %c0_37] : memref<8x16x384xf32, #tpu.memory_space<vmem>>, vector<1x16x384xf32>
    %143 = vector.shape_cast %142 : vector<1x16x384xf32> to vector<16x384xf32>
    %144 = arith.truncf %140 : vector<16x128xf32> to vector<16x128xbf16>
    %c0_38 = arith.constant 0 : index
    %c0_39 = arith.constant 0 : index
    %145 = vector.load %arg3[%c0_38, %c0_39] : memref<128x384xbf16, #tpu.memory_space<vmem>>, vector<128x384xbf16>
    %cst_40 = arith.constant dense<0.000000e+00> : vector<16x384xf32>
    %146 = tpu.matmul %144, %145, %cst_40 {dimension_numbers = #tpu.dot_dimension_numbers<[1], [0], [0], [1], [0, 0, 1, 1], [], []>} : vector<16x128xbf16>, vector<128x384xbf16>, vector<16x384xf32> -> vector<16x384xf32>
    %147 = vector.extract_strided_slice %143 {offsets = [0, 0], sizes = [16, 128], strides = [1, 1]} : vector<16x384xf32> to vector<16x128xf32>
    %148 = vector.extract_strided_slice %143 {offsets = [0, 128], sizes = [16, 128], strides = [1, 1]} : vector<16x384xf32> to vector<16x128xf32>
    %149 = vector.extract_strided_slice %143 {offsets = [0, 256], sizes = [16, 128], strides = [1, 1]} : vector<16x384xf32> to vector<16x128xf32>
    %150 = vector.extract_strided_slice %146 {offsets = [0, 0], sizes = [16, 128], strides = [1, 1]} : vector<16x384xf32> to vector<16x128xf32>
    %151 = vector.extract_strided_slice %146 {offsets = [0, 128], sizes = [16, 128], strides = [1, 1]} : vector<16x384xf32> to vector<16x128xf32>
    %152 = vector.extract_strided_slice %146 {offsets = [0, 256], sizes = [16, 128], strides = [1, 1]} : vector<16x384xf32> to vector<16x128xf32>
    %153 = arith.addf %147, %150 : vector<16x128xf32>
    %154 = arith.negf %153 : vector<16x128xf32>
    %155 = math.exp %154 : vector<16x128xf32>
    %cst_41 = arith.constant 1.000000e+00 : f32
    %156 = vector.broadcast %cst_41 : f32 to vector<16x128xf32>
    %157 = arith.addf %156, %155 : vector<16x128xf32>
    %158 = arith.divf %156, %157 : vector<16x128xf32>
    %159 = arith.addf %148, %151 : vector<16x128xf32>
    %160 = arith.negf %159 : vector<16x128xf32>
    %161 = math.exp %160 : vector<16x128xf32>
    %cst_42 = arith.constant 1.000000e+00 : f32
    %162 = vector.broadcast %cst_42 : f32 to vector<16x128xf32>
    %163 = arith.addf %162, %161 : vector<16x128xf32>
    %164 = arith.divf %162, %163 : vector<16x128xf32>
    %165 = vector.broadcast %3 : vector<1x128xf32> to vector<16x128xf32>
    %166 = arith.addf %152, %165 : vector<16x128xf32>
    %167 = arith.mulf %158, %166 : vector<16x128xf32>
    %168 = arith.addf %149, %167 : vector<16x128xf32>
    %169 = math.tanh %168 : vector<16x128xf32>
    %cst_43 = arith.constant 1.000000e+00 : f32
    %170 = vector.broadcast %cst_43 : f32 to vector<16x128xf32>
    %171 = arith.subf %170, %164 : vector<16x128xf32>
    %172 = arith.mulf %171, %169 : vector<16x128xf32>
    %173 = arith.mulf %164, %140 : vector<16x128xf32>
    %174 = arith.addf %172, %173 : vector<16x128xf32>
    %c5_i32 = arith.constant 5 : i32
    %175 = arith.index_cast %c5_i32 : i32 to index
    %c0_44 = arith.constant 0 : index
    %c0_45 = arith.constant 0 : index
    %176 = vector.load %arg2[%175, %c0_44, %c0_45] : memref<8x16x384xf32, #tpu.memory_space<vmem>>, vector<1x16x384xf32>
    %177 = vector.shape_cast %176 : vector<1x16x384xf32> to vector<16x384xf32>
    %178 = arith.truncf %174 : vector<16x128xf32> to vector<16x128xbf16>
    %c0_46 = arith.constant 0 : index
    %c0_47 = arith.constant 0 : index
    %179 = vector.load %arg3[%c0_46, %c0_47] : memref<128x384xbf16, #tpu.memory_space<vmem>>, vector<128x384xbf16>
    %cst_48 = arith.constant dense<0.000000e+00> : vector<16x384xf32>
    %180 = tpu.matmul %178, %179, %cst_48 {dimension_numbers = #tpu.dot_dimension_numbers<[1], [0], [0], [1], [0, 0, 1, 1], [], []>} : vector<16x128xbf16>, vector<128x384xbf16>, vector<16x384xf32> -> vector<16x384xf32>
    %181 = vector.extract_strided_slice %177 {offsets = [0, 0], sizes = [16, 128], strides = [1, 1]} : vector<16x384xf32> to vector<16x128xf32>
    %182 = vector.extract_strided_slice %177 {offsets = [0, 128], sizes = [16, 128], strides = [1, 1]} : vector<16x384xf32> to vector<16x128xf32>
    %183 = vector.extract_strided_slice %177 {offsets = [0, 256], sizes = [16, 128], strides = [1, 1]} : vector<16x384xf32> to vector<16x128xf32>
    %184 = vector.extract_strided_slice %180 {offsets = [0, 0], sizes = [16, 128], strides = [1, 1]} : vector<16x384xf32> to vector<16x128xf32>
    %185 = vector.extract_strided_slice %180 {offsets = [0, 128], sizes = [16, 128], strides = [1, 1]} : vector<16x384xf32> to vector<16x128xf32>
    %186 = vector.extract_strided_slice %180 {offsets = [0, 256], sizes = [16, 128], strides = [1, 1]} : vector<16x384xf32> to vector<16x128xf32>
    %187 = arith.addf %181, %184 : vector<16x128xf32>
    %188 = arith.negf %187 : vector<16x128xf32>
    %189 = math.exp %188 : vector<16x128xf32>
    %cst_49 = arith.constant 1.000000e+00 : f32
    %190 = vector.broadcast %cst_49 : f32 to vector<16x128xf32>
    %191 = arith.addf %190, %189 : vector<16x128xf32>
    %192 = arith.divf %190, %191 : vector<16x128xf32>
    %193 = arith.addf %182, %185 : vector<16x128xf32>
    %194 = arith.negf %193 : vector<16x128xf32>
    %195 = math.exp %194 : vector<16x128xf32>
    %cst_50 = arith.constant 1.000000e+00 : f32
    %196 = vector.broadcast %cst_50 : f32 to vector<16x128xf32>
    %197 = arith.addf %196, %195 : vector<16x128xf32>
    %198 = arith.divf %196, %197 : vector<16x128xf32>
    %199 = vector.broadcast %3 : vector<1x128xf32> to vector<16x128xf32>
    %200 = arith.addf %186, %199 : vector<16x128xf32>
    %201 = arith.mulf %192, %200 : vector<16x128xf32>
    %202 = arith.addf %183, %201 : vector<16x128xf32>
    %203 = math.tanh %202 : vector<16x128xf32>
    %cst_51 = arith.constant 1.000000e+00 : f32
    %204 = vector.broadcast %cst_51 : f32 to vector<16x128xf32>
    %205 = arith.subf %204, %198 : vector<16x128xf32>
    %206 = arith.mulf %205, %203 : vector<16x128xf32>
    %207 = arith.mulf %198, %174 : vector<16x128xf32>
    %208 = arith.addf %206, %207 : vector<16x128xf32>
    %c6_i32 = arith.constant 6 : i32
    %209 = arith.index_cast %c6_i32 : i32 to index
    %c0_52 = arith.constant 0 : index
    %c0_53 = arith.constant 0 : index
    %210 = vector.load %arg2[%209, %c0_52, %c0_53] : memref<8x16x384xf32, #tpu.memory_space<vmem>>, vector<1x16x384xf32>
    %211 = vector.shape_cast %210 : vector<1x16x384xf32> to vector<16x384xf32>
    %212 = arith.truncf %208 : vector<16x128xf32> to vector<16x128xbf16>
    %c0_54 = arith.constant 0 : index
    %c0_55 = arith.constant 0 : index
    %213 = vector.load %arg3[%c0_54, %c0_55] : memref<128x384xbf16, #tpu.memory_space<vmem>>, vector<128x384xbf16>
    %cst_56 = arith.constant dense<0.000000e+00> : vector<16x384xf32>
    %214 = tpu.matmul %212, %213, %cst_56 {dimension_numbers = #tpu.dot_dimension_numbers<[1], [0], [0], [1], [0, 0, 1, 1], [], []>} : vector<16x128xbf16>, vector<128x384xbf16>, vector<16x384xf32> -> vector<16x384xf32>
    %215 = vector.extract_strided_slice %211 {offsets = [0, 0], sizes = [16, 128], strides = [1, 1]} : vector<16x384xf32> to vector<16x128xf32>
    %216 = vector.extract_strided_slice %211 {offsets = [0, 128], sizes = [16, 128], strides = [1, 1]} : vector<16x384xf32> to vector<16x128xf32>
    %217 = vector.extract_strided_slice %211 {offsets = [0, 256], sizes = [16, 128], strides = [1, 1]} : vector<16x384xf32> to vector<16x128xf32>
    %218 = vector.extract_strided_slice %214 {offsets = [0, 0], sizes = [16, 128], strides = [1, 1]} : vector<16x384xf32> to vector<16x128xf32>
    %219 = vector.extract_strided_slice %214 {offsets = [0, 128], sizes = [16, 128], strides = [1, 1]} : vector<16x384xf32> to vector<16x128xf32>
    %220 = vector.extract_strided_slice %214 {offsets = [0, 256], sizes = [16, 128], strides = [1, 1]} : vector<16x384xf32> to vector<16x128xf32>
    %221 = arith.addf %215, %218 : vector<16x128xf32>
    %222 = arith.negf %221 : vector<16x128xf32>
    %223 = math.exp %222 : vector<16x128xf32>
    %cst_57 = arith.constant 1.000000e+00 : f32
    %224 = vector.broadcast %cst_57 : f32 to vector<16x128xf32>
    %225 = arith.addf %224, %223 : vector<16x128xf32>
    %226 = arith.divf %224, %225 : vector<16x128xf32>
    %227 = arith.addf %216, %219 : vector<16x128xf32>
    %228 = arith.negf %227 : vector<16x128xf32>
    %229 = math.exp %228 : vector<16x128xf32>
    %cst_58 = arith.constant 1.000000e+00 : f32
    %230 = vector.broadcast %cst_58 : f32 to vector<16x128xf32>
    %231 = arith.addf %230, %229 : vector<16x128xf32>
    %232 = arith.divf %230, %231 : vector<16x128xf32>
    %233 = vector.broadcast %3 : vector<1x128xf32> to vector<16x128xf32>
    %234 = arith.addf %220, %233 : vector<16x128xf32>
    %235 = arith.mulf %226, %234 : vector<16x128xf32>
    %236 = arith.addf %217, %235 : vector<16x128xf32>
    %237 = math.tanh %236 : vector<16x128xf32>
    %cst_59 = arith.constant 1.000000e+00 : f32
    %238 = vector.broadcast %cst_59 : f32 to vector<16x128xf32>
    %239 = arith.subf %238, %232 : vector<16x128xf32>
    %240 = arith.mulf %239, %237 : vector<16x128xf32>
    %241 = arith.mulf %232, %208 : vector<16x128xf32>
    %242 = arith.addf %240, %241 : vector<16x128xf32>
    %c7_i32 = arith.constant 7 : i32
    %243 = arith.index_cast %c7_i32 : i32 to index
    %c0_60 = arith.constant 0 : index
    %c0_61 = arith.constant 0 : index
    %244 = vector.load %arg2[%243, %c0_60, %c0_61] : memref<8x16x384xf32, #tpu.memory_space<vmem>>, vector<1x16x384xf32>
    %245 = vector.shape_cast %244 : vector<1x16x384xf32> to vector<16x384xf32>
    %246 = arith.truncf %242 : vector<16x128xf32> to vector<16x128xbf16>
    %c0_62 = arith.constant 0 : index
    %c0_63 = arith.constant 0 : index
    %247 = vector.load %arg3[%c0_62, %c0_63] : memref<128x384xbf16, #tpu.memory_space<vmem>>, vector<128x384xbf16>
    %cst_64 = arith.constant dense<0.000000e+00> : vector<16x384xf32>
    %248 = tpu.matmul %246, %247, %cst_64 {dimension_numbers = #tpu.dot_dimension_numbers<[1], [0], [0], [1], [0, 0, 1, 1], [], []>} : vector<16x128xbf16>, vector<128x384xbf16>, vector<16x384xf32> -> vector<16x384xf32>
    %249 = vector.extract_strided_slice %245 {offsets = [0, 0], sizes = [16, 128], strides = [1, 1]} : vector<16x384xf32> to vector<16x128xf32>
    %250 = vector.extract_strided_slice %245 {offsets = [0, 128], sizes = [16, 128], strides = [1, 1]} : vector<16x384xf32> to vector<16x128xf32>
    %251 = vector.extract_strided_slice %245 {offsets = [0, 256], sizes = [16, 128], strides = [1, 1]} : vector<16x384xf32> to vector<16x128xf32>
    %252 = vector.extract_strided_slice %248 {offsets = [0, 0], sizes = [16, 128], strides = [1, 1]} : vector<16x384xf32> to vector<16x128xf32>
    %253 = vector.extract_strided_slice %248 {offsets = [0, 128], sizes = [16, 128], strides = [1, 1]} : vector<16x384xf32> to vector<16x128xf32>
    %254 = vector.extract_strided_slice %248 {offsets = [0, 256], sizes = [16, 128], strides = [1, 1]} : vector<16x384xf32> to vector<16x128xf32>
    %255 = arith.addf %249, %252 : vector<16x128xf32>
    %256 = arith.negf %255 : vector<16x128xf32>
    %257 = math.exp %256 : vector<16x128xf32>
    %cst_65 = arith.constant 1.000000e+00 : f32
    %258 = vector.broadcast %cst_65 : f32 to vector<16x128xf32>
    %259 = arith.addf %258, %257 : vector<16x128xf32>
    %260 = arith.divf %258, %259 : vector<16x128xf32>
    %261 = arith.addf %250, %253 : vector<16x128xf32>
    %262 = arith.negf %261 : vector<16x128xf32>
    %263 = math.exp %262 : vector<16x128xf32>
    %cst_66 = arith.constant 1.000000e+00 : f32
    %264 = vector.broadcast %cst_66 : f32 to vector<16x128xf32>
    %265 = arith.addf %264, %263 : vector<16x128xf32>
    %266 = arith.divf %264, %265 : vector<16x128xf32>
    %267 = vector.broadcast %3 : vector<1x128xf32> to vector<16x128xf32>
    %268 = arith.addf %254, %267 : vector<16x128xf32>
    %269 = arith.mulf %260, %268 : vector<16x128xf32>
    %270 = arith.addf %251, %269 : vector<16x128xf32>
    %271 = math.tanh %270 : vector<16x128xf32>
    %cst_67 = arith.constant 1.000000e+00 : f32
    %272 = vector.broadcast %cst_67 : f32 to vector<16x128xf32>
    %273 = arith.subf %272, %266 : vector<16x128xf32>
    %274 = arith.mulf %273, %271 : vector<16x128xf32>
    %275 = arith.mulf %266, %242 : vector<16x128xf32>
    %276 = arith.addf %274, %275 : vector<16x128xf32>
    %c8_i32 = arith.constant 8 : i32
    %c0_68 = arith.constant 0 : index
    %c0_69 = arith.constant 0 : index
    %277 = vector.load %arg5[%c0_68, %c0_69] : memref<16x128xf32, #tpu.memory_space<vmem>>, vector<16x128xf32>
    tpu.vector_store %arg5[%c0_68, %c0_69], %276 {strides = array<i32>} : memref<16x128xf32, #tpu.memory_space<vmem>>, vector<16x128xf32>,
    return
  }
  func.func @transform_0(%arg0: i32, %arg1: i32) -> (i32, i32, i32) {
    %c0_i32 = arith.constant 0 : i32
    %c0_i32_0 = arith.constant 0 : i32
    return %arg1, %arg0, %c0_i32 : i32, i32, i32
  }
  func.func @transform_1(%arg0: i32, %arg1: i32) -> (i32, i32) {
    %c0_i32 = arith.constant 0 : i32
    %c0_i32_0 = arith.constant 0 : i32
    %c0_i32_1 = arith.constant 0 : i32
    return %c0_i32, %c0_i32_0 : i32, i32
  }
  func.func @transform_2(%arg0: i32, %arg1: i32) -> (i32, i32) {
    %c0_i32 = arith.constant 0 : i32
    %c0_i32_0 = arith.constant 0 : i32
    %c0_i32_1 = arith.constant 0 : i32
    return %c0_i32, %c0_i32_0 : i32, i32
  }
  func.func @transform_3(%arg0: i32, %arg1: i32) -> (i32, i32) {
    %c0_i32 = arith.constant 0 : i32
    %c0_i32_0 = arith.constant 0 : i32
    return %arg0, %c0_i32 : i32, i32
  }
}

</mosaic_0001>

<bundles_post_ra>
// kernel: tpu_custom_call.1
= control target key start
LH: loop header
LB: loop body
LE: loop exit
PB: predicated region body
PF: predicated region fallthrough
CT: control target
= control target key end

     0   :  { %8 = vsyncpa [#allocation3], 0  ;;  %s2335_s0 = inlined_call_operand.hbm [shape: f32[8,16,384], index: 0, kind: input, shape index: {}]   ;;  %s2336_s1 = inlined_call_operand.hbm [shape: bf16[128,384], index: 1, kind: input, shape index: {}]   ;;  %s2337_s2 = inlined_call_operand.vmem [shape: f32[1,128], index: 2, kind: input, shape index: {}]   ;;  %s2338_s3 = inlined_call_operand.hbm [shape: f32[16,128], index: 3, kind: output, shape index: {}]  }
   0x1   :  { %9 = vsyncpa [#allocation6], 0 }
   0x2   :  { %10 = vsyncpa [#allocation4], 0  ;;  %s15_s14 = sshll.u32 %s2335_s0, 4  ;;  %s1810_s15 = smov [#allocation2]   ;;  %s16_s14 = int_to_ptr.hbm [resolvable:$true] %s15_s14 }
   0x3   :  { %s17_s16 = sshll.u32 %s1810_s15, 4  ;;  %s28_s19 = sshll.u32 %s2336_s1, 4  ;;  %s18_s16 = int_to_ptr.vmem [resolvable:$true] %s17_s16  ;;  %s29_s19 = int_to_ptr.hbm [resolvable:$true] %s28_s19 }
   0x4   :  { %s1811_s20 = smov 384   ;;  %s1812_s21 = smov 24  }
   0x5   :  { %23 = dma.hbm_to_vmem [thread:$0]  %s16_s14, 6144, %s18_s16, [#allocation3], %s1811_s20, %s1811_s20, %s1812_s21  }
   0x6   :  { %s1813_s22 = smov [#allocation5]   ;;  %s1814_s24 = smov 192  }
   0x7   :  { %s30_s23 = sshll.u32 %s1813_s22, 4  ;;  %s1815_s25 = smov 12   ;;  %s31_s23 = int_to_ptr.vmem [resolvable:$true] %s30_s23 }
   0x8   :  { %36 = dma.hbm_to_vmem [thread:$0]  %s29_s19, 3072, %s31_s23, [#allocation6], %s1814_s24, %s1814_s24, %s1815_s25  }
   0x9   :  { %1804 = dma.done.wait [#allocation3], 6144  }
   0xa   :  { %1805 = vsyncadd [#allocation3], 4294961152 }
   0xb   :  { %1806 = dma.done.wait [#allocation6], 3072  }
   0xc   :  { %1807 = vsyncadd [#allocation6], 4294964224  ;;  %v1494_v0 = vld [vmem:[#allocation5 + $0xa8] sm:$0xf]  ;;  %v1558_v1 = vld [vmem:[#allocation5 + $0xb0] sm:$0xf0] }
   0xd   :  { %v1557_v2 = vld [vmem:[#allocation5 + $0xac] sm:$0xf]  ;;  %v1846_v3 = vor.u32 %v1558_v1, %v1494_v0  ;;  %v1496_v4 = vld [vmem:[#allocation5 + $0xb4] sm:$0xf0]  ;;  %v1482_v5 = vld [vmem:[#allocation5 + $0x90] sm:$0xf] }
   0xe   :  { %v1555_v6 = vld [vmem:[#allocation5 + $0x98] sm:$0xf0]  ;;  %v1848_v7 = vor.u32 %v1557_v2, %v1496_v4  ;;  %v1554_v8 = vld [vmem:[#allocation5 + $0x94] sm:$0xf]  ;;  %v1484_v9 = vld [vmem:[#allocation5 + $0x9c] sm:$0xf0] }
   0xf   :  { %223 = vmatpush.bf16.msra.mxu0 %v1846_v3  ;;  %v1851_v10 = vor.u32 %v1555_v6, %v1482_v5  ;;  %372 = vmatpush.bf16.msra.mxu3 %v1846_v3  ;;  %v1855_v11 = vor.u32 %v1554_v8, %v1484_v9  ;;  %v1470_v12 = vld [vmem:[#allocation5 + $0x78] sm:$0xf]  ;;  %v1552_v13 = vld [vmem:[#allocation5 + $0x80] sm:$0xf0]  ;;  %v1551_v14 = vld [vmem:[#allocation5 + $0x7c] sm:$0xf] }
  0x10   :  { %237 = vmatpush.bf16.msra.mxu1 %v1848_v7  ;;  %v1472_v15 = vld [vmem:[#allocation5 + $0x84] sm:$0xf0]  ;;  %v1502_v16 = vld [vmem:[#allocation5 + $0xb0] sm:$0xf]  ;;  %v1559_v17 = vld [vmem:[#allocation5 + $0xb8] sm:$0xf0]  ;;  %v1860_v19 = vor.u32 %v1552_v13, %v1470_v12 }
  0x11   :  { %v1857_v18 = vor.u32 %v1559_v17, %v1502_v16  ;;  %v1490_v20 = vld [vmem:[#allocation5 + $0x98] sm:$0xf]  ;;  %v1556_v21 = vld [vmem:[#allocation5 + $0xa0] sm:$0xf0]  ;;  %v1864_v22 = vor.u32 %v1551_v14, %v1472_v15  ;;  %v1458_v23 = vld [vmem:[#allocation5 + $0x60] sm:$0xf] }
  0x12   :  { %v1549_v24 = vld [vmem:[#allocation5 + $0x68] sm:$0xf0]  ;;  %v1548_v25 = vld [vmem:[#allocation5 + $0x64] sm:$0xf]  ;;  %v1867_v26 = vor.u32 %v1556_v21, %v1490_v20  ;;  %v1460_v27 = vld [vmem:[#allocation5 + $0x6c] sm:$0xf0] }
  0x13   :  { %224 = vmatpush.bf16.msra.mxu0 %v1851_v10  ;;  %373 = vmatpush.bf16.msra.mxu3 %v1851_v10  ;;  %v1478_v28 = vld [vmem:[#allocation5 + $0x80] sm:$0xf]  ;;  %v1553_v29 = vld [vmem:[#allocation5 + $0x88] sm:$0xf0]  ;;  %v1870_v30 = vor.u32 %v1549_v24, %v1458_v23  ;;  %v1874_v31 = vor.u32 %v1548_v25, %v1460_v27  ;;  %v1446_v32 = vld [vmem:[#allocation5 + $0x48] sm:$0xf] }
  0x14   :  { %238 = vmatpush.bf16.msra.mxu1 %v1855_v11  ;;  %251 = vmatpush.bf16.msra.mxu2 %v1857_v18  ;;  %v1546_v33 = vld [vmem:[#allocation5 + $0x50] sm:$0xf0]  ;;  %v1545_v34 = vld [vmem:[#allocation5 + $0x4c] sm:$0xf]  ;;  %v1877_v35 = vor.u32 %v1553_v29, %v1478_v28  ;;  %v1448_v36 = vld [vmem:[#allocation5 + $0x54] sm:$0xf0] }
  0x15   :  { %v1466_v37 = vld [vmem:[#allocation5 + $0x68] sm:$0xf]  ;;  %v1550_v38 = vld [vmem:[#allocation5 + $0x70] sm:$0xf0]  ;;  %v1880_v39 = vor.u32 %v1546_v33, %v1446_v32  ;;  %v1434_v40 = vld [vmem:[#allocation5 + $0x30] sm:$0xf]  ;;  %v1884_v41 = vor.u32 %v1545_v34, %v1448_v36 }
  0x16   :  { %v1543_v42 = vld [vmem:[#allocation5 + $0x38] sm:$0xf0]  ;;  %v1542_v43 = vld [vmem:[#allocation5 + $0x34] sm:$0xf]  ;;  %v1887_v44 = vor.u32 %v1550_v38, %v1466_v37  ;;  %v1436_v45 = vld [vmem:[#allocation5 + $0x3c] sm:$0xf0] }
  0x17   :  { %225 = vmatpush.bf16.msra.mxu0 %v1860_v19  ;;  %374 = vmatpush.bf16.msra.mxu3 %v1860_v19  ;;  %v1454_v46 = vld [vmem:[#allocation5 + $0x50] sm:$0xf]  ;;  %v1547_v47 = vld [vmem:[#allocation5 + $0x58] sm:$0xf0]  ;;  %v1890_v48 = vor.u32 %v1543_v42, %v1434_v40  ;;  %v1894_v49 = vor.u32 %v1542_v43, %v1436_v45  ;;  %v1422_v50 = vld [vmem:[#allocation5 + $0x18] sm:$0xf] }
  0x18   :  { %239 = vmatpush.bf16.msra.mxu1 %v1864_v22  ;;  %252 = vmatpush.bf16.msra.mxu2 %v1867_v26  ;;  %v1540_v51 = vld [vmem:[#allocation5 + $0x20] sm:$0xf0]  ;;  %v1539_v52 = vld [vmem:[#allocation5 + $0x1c] sm:$0xf]  ;;  %v1897_v53 = vor.u32 %v1547_v47, %v1454_v46  ;;  %v1424_v54 = vld [vmem:[#allocation5 + $0x24] sm:$0xf0] }
  0x19   :  { %v1442_v55 = vld [vmem:[#allocation5 + $0x38] sm:$0xf]  ;;  %v1544_v56 = vld [vmem:[#allocation5 + $0x40] sm:$0xf0]  ;;  %v1900_v57 = vor.u32 %v1540_v51, %v1422_v50  ;;  %v1904_v58 = vor.u32 %v1539_v52, %v1424_v54  ;;  %v1410_v59 = vld [vmem:[#allocation5] sm:$0xf] }
  0x1a   :  { %v1537_v60 = vld [vmem:[#allocation5 + $0x8] sm:$0xf0]  ;;  %v1536_v61 = vld [vmem:[#allocation5 + $0x4] sm:$0xf]  ;;  %v1907_v62 = vor.u32 %v1544_v56, %v1442_v55  ;;  %v1412_v63 = vld [vmem:[#allocation5 + $0xc] sm:$0xf0] }
  0x1b   :  { %226 = vmatpush.bf16.msra.mxu0 %v1870_v30  ;;  %375 = vmatpush.bf16.msra.mxu3 %v1870_v30  ;;  %v1430_v0 = vld [vmem:[#allocation5 + $0x20] sm:$0xf]  ;;  %v1541_v1 = vld [vmem:[#allocation5 + $0x28] sm:$0xf0]  ;;  %v1910_v2 = vor.u32 %v1537_v60, %v1410_v59  ;;  %v1914_v4 = vor.u32 %v1536_v61, %v1412_v63  ;;  %v1418_v6 = vld [vmem:[#allocation5 + $0x8] sm:$0xf] }
  0x1c   :  { %240 = vmatpush.bf16.msra.mxu1 %v1874_v31  ;;  %253 = vmatpush.bf16.msra.mxu2 %v1877_v35  ;;  %v1917_v5 = vor.u32 %v1541_v1, %v1430_v0  ;;  %v1538_v8 = vld [vmem:[#allocation5 + $0x10] sm:$0xf0]  ;;  %v1816_v12 = vmov 0.0|0.0   ;;  %v56_v13 = vld [vmem:[#allocation2] sm:$0xff]  ;;  %v57_v14 = vld [vmem:[#allocation2 + $0x8] sm:$0xff]  ;;  %s1394_s4 = sshll.u32 %s2338_s3, 4  ;;  %s1395_s4 = int_to_ptr.hbm [resolvable:$true] %s1394_s4 }
  0x1d   :  { %v1923_v9 = vor.u32 %v1538_v8, %v1418_v6  ;;  %v59_v24 = vld [vmem:[#allocation2 + $0x18] sm:$0xff]  ;;  %v60_v25 = vld [vmem:[#allocation2 + $0x20] sm:$0xff]  ;;  %s1818_s5 = smov 128   ;;  %s1819_s6 = smov 8  }
  0x1e   :  { %v1992_v54 = vld [vmem:[%s2337_s2] ss:$0 sm:$0xff] }
  0x1f   :  { %227 = vmatpush.bf16.msra.mxu0 %v1880_v39  ;;  %376 = vmatpush.bf16.msra.mxu3 %v1880_v39 }
  0x20   :  { %241 = vmatpush.bf16.msra.mxu1 %v1884_v41  ;;  %254 = vmatpush.bf16.msra.mxu2 %v1887_v44 }
  0x23   :  { %228 = vmatpush.bf16.msra.mxu0 %v1890_v48  ;;  %377 = vmatpush.bf16.msra.mxu3 %v1890_v48 }
  0x24   :  { %242 = vmatpush.bf16.msra.mxu1 %v1894_v49  ;;  %255 = vmatpush.bf16.msra.mxu2 %v1897_v53 }
  0x27   :  { %229 = vmatpush.bf16.msra.mxu0 %v1900_v57  ;;  %378 = vmatpush.bf16.msra.mxu3 %v1900_v57 }
  0x28   :  { %243 = vmatpush.bf16.msra.mxu1 %v1904_v58  ;;  %256 = vmatpush.bf16.msra.mxu2 %v1907_v62 }
  0x2b   :  { %230 = vmatpush.bf16.msra.mxu0 %v1910_v2  ;;  %379 = vmatpush.bf16.msra.mxu3 %v1910_v2 }
  0x2c   :  { %244 = vmatpush.bf16.msra.mxu1 %v1914_v4  ;;  %257 = vmatpush.bf16.msra.mxu2 %v1917_v5 }
  0x2e   :  { %231 = vmatmul.bf16.vlgmr.msra.gmra.mxu0 %v1816_v12 }
  0x2f   :  { %386 = vmatpush.bf16.msrb.mxu0 %v1848_v7  ;;  %532 = vmatpush.bf16.msrb.mxu3 %v1848_v7 }
  0x30   :  { %400 = vmatpush.bf16.msrb.mxu1 %v1857_v18  ;;  %258 = vmatpush.bf16.msra.mxu2 %v1923_v9 }
  0x31   :  { %245 = vmatmul.bf16.vlgmr.msra.gmra.mxu1 %v1816_v12 }
  0x33   :  { %387 = vmatpush.bf16.msrb.mxu0 %v1855_v11  ;;  %533 = vmatpush.bf16.msrb.mxu3 %v1855_v11 }
  0x34   :  { %401 = vmatpush.bf16.msrb.mxu1 %v1867_v26  ;;  %518 = vmatpush.bf16.msrb.mxu2 %v1846_v3 }
  0x35   :  { %259 = vmatmul.bf16.vlgmr.msra.gmra.mxu2 %v1816_v12 }
  0x37   :  { %388 = vmatpush.bf16.msrb.mxu0 %v1864_v22  ;;  %534 = vmatpush.bf16.msrb.mxu3 %v1864_v22 }
  0x38   :  { %402 = vmatpush.bf16.msrb.mxu1 %v1877_v35  ;;  %519 = vmatpush.bf16.msrb.mxu2 %v1851_v10 }
  0x3b   :  { %389 = vmatpush.bf16.msrb.mxu0 %v1874_v31  ;;  %535 = vmatpush.bf16.msrb.mxu3 %v1874_v31 }
  0x3c   :  { %403 = vmatpush.bf16.msrb.mxu1 %v1887_v44  ;;  %520 = vmatpush.bf16.msrb.mxu2 %v1860_v19 }
  0x3f   :  { %390 = vmatpush.bf16.msrb.mxu0 %v1884_v41  ;;  %536 = vmatpush.bf16.msrb.mxu3 %v1884_v41 }
  0x40   :  { %404 = vmatpush.bf16.msrb.mxu1 %v1897_v53  ;;  %521 = vmatpush.bf16.msrb.mxu2 %v1870_v30 }
  0x43   :  { %391 = vmatpush.bf16.msrb.mxu0 %v1894_v49  ;;  %537 = vmatpush.bf16.msrb.mxu3 %v1894_v49 }
  0x44   :  { %405 = vmatpush.bf16.msrb.mxu1 %v1907_v62  ;;  %522 = vmatpush.bf16.msrb.mxu2 %v1880_v39 }
  0x47   :  { %392 = vmatpush.bf16.msrb.mxu0 %v1904_v58  ;;  %538 = vmatpush.bf16.msrb.mxu3 %v1904_v58 }
  0x48   :  { %406 = vmatpush.bf16.msrb.mxu1 %v1917_v5  ;;  %523 = vmatpush.bf16.msrb.mxu2 %v1890_v48 }
  0x4b   :  { %393 = vmatpush.bf16.msrb.mxu0 %v1914_v4  ;;  %539 = vmatpush.bf16.msrb.mxu3 %v1914_v4 }
  0x4c   :  { %407 = vmatpush.bf16.msrb.mxu1 %v1923_v9  ;;  %524 = vmatpush.bf16.msrb.mxu2 %v1900_v57 }
  0x4f   :  { %546 = vmatpush.bf16.msra.mxu0 %v1857_v18 }
  0x50   :  { %664 = vmatpush.bf16.msra.mxu1 %v1846_v3  ;;  %525 = vmatpush.bf16.msrb.mxu2 %v1910_v2 }
  0x53   :  { %547 = vmatpush.bf16.msra.mxu0 %v1867_v26 }
  0x54   :  { %678 = vmatpush.bf16.msra.mxu2 %v1848_v7  ;;  %665 = vmatpush.bf16.msra.mxu1 %v1851_v10 }
  0x57   :  { %548 = vmatpush.bf16.msra.mxu0 %v1877_v35 }
  0x58   :  { %679 = vmatpush.bf16.msra.mxu2 %v1855_v11  ;;  %666 = vmatpush.bf16.msra.mxu1 %v1860_v19 }
  0x5b   :  { %549 = vmatpush.bf16.msra.mxu0 %v1887_v44 }
  0x5c   :  { %680 = vmatpush.bf16.msra.mxu2 %v1864_v22  ;;  %667 = vmatpush.bf16.msra.mxu1 %v1870_v30 }
  0x5f   :  { %550 = vmatpush.bf16.msra.mxu0 %v1897_v53 }
  0x60   :  { %681 = vmatpush.bf16.msra.mxu2 %v1874_v31  ;;  %668 = vmatpush.bf16.msra.mxu1 %v1880_v39 }
  0x63   :  { %551 = vmatpush.bf16.msra.mxu0 %v1907_v62 }
  0x64   :  { %682 = vmatpush.bf16.msra.mxu2 %v1884_v41  ;;  %669 = vmatpush.bf16.msra.mxu1 %v1890_v48 }
  0x67   :  { %552 = vmatpush.bf16.msra.mxu0 %v1917_v5 }
  0x68   :  { %683 = vmatpush.bf16.msra.mxu2 %v1894_v49  ;;  %670 = vmatpush.bf16.msra.mxu1 %v1900_v57 }
  0x6b   :  { %553 = vmatpush.bf16.msra.mxu0 %v1923_v9 }
  0x6c   :  { %684 = vmatpush.bf16.msra.mxu2 %v1904_v58  ;;  %671 = vmatpush.bf16.msra.mxu1 %v1910_v2 }
  0x70   :  { %685 = vmatpush.bf16.msra.mxu2 %v1914_v4 }
  0xab   :  { %v232_v15 = vpop.f32.mrf.mxu0 }
  0xac   :  { %v265_v16 = vadd.f32 %v232_v15, %v56_v13 }
  0xae   :  { %v246_v17 = vpop.f32.mrf.mxu1  ;;  %v1504_v21 = vmul.f32 -1.442695, %v265_v16 }
  0xaf   :  { %v305_v20 = vadd.f32 %v246_v17, %v57_v14 }
  0xb0   :  { %1571 = vpow2.f32 %v1504_v21  ;;  %v58_v21 = vld [vmem:[#allocation2 + $0x10] sm:$0xff] }
  0xb1   :  { %v1506_v23 = vmul.f32 -1.442695, %v305_v20 }
  0xb3   :  { %1573 = vpow2.f32 %v1506_v23  ;;  %v234_v27 = vpop.f32.mrf.mxu0 }
  0xb4   :  { %v266_v28 = vadd.f32 %v234_v27, %v59_v24 }
  0xb6   :  { %v248_v29 = vpop.f32.mrf.mxu1  ;;  %v1572_v33 = vpop.eup %1571  ;;  %v1505_v34 = vmul.f32 -1.442695, %v266_v28 }
  0xb7   :  { %v306_v32 = vadd.f32 %v248_v29, %v60_v25  ;;  %v273_v37 = vadd.f32 1.0, %v1572_v33 }
  0xb8   :  { %1575 = vpow2.f32 %v1505_v34  ;;  %v260_v56 = vpop.f32.mrf.mxu2 }
  0xb9   :  { %v1574_v36 = vpop.eup %1573  ;;  %v1507_v38 = vmul.f32 -1.442695, %v306_v32  ;;  %1577 = vrcp.f32 %v273_v37  ;;  %v286_v59 = vand.u32 2147483648, %v273_v37  ;;  %v284_v61 = vand.u32 2147483647, %v273_v37 }
  0xba   :  { %v1982_v40 = vadd.f32 1.0, %v1574_v36  ;;  %vm280_vm1 = vweird.f32 %v273_v37  ;;  %v348_v0 = vadd.f32 %v1992_v54, %v260_v56 }
  0xbb   :  { %v287_v8 = vor.u32 1.1754944e-38, %v286_v59  ;;  %vm285_vm3 = vcmp.eq.f32.partialorder %v284_v61, 8.507059e+37 }
  0xbc   :  { %1579 = vrcp.f32 %v1982_v40  ;;  %vm320_vm6 = vweird.f32 %v1982_v40 }
  0xbd   :  { %1581 = vpow2.f32 %v1507_v38 }
  0xbe   :  { %v1576_v42 = vpop.eup %1575 }
  0xbf   :  { %v1578_v43 = vpop.eup %1577  ;;  %v274_v45 = vadd.f32 1.0, %v1576_v42 }
  0xc0   :  { %v276_v47 = vmul.f32 %v1578_v43, %v273_v37  ;;  %vm281_vm0 = vweird.f32 %v1578_v43  ;;  %v262_v29 = vpop.f32.mrf.mxu2 }
  0xc1   :  { %1583 = vrcp.f32 %v274_v45  ;;  %vm282_vm2 = vmor %vm280_vm1, %vm281_vm0  ;;  %v301_v23 = vand.u32 2147483648, %v274_v45  ;;  %v299_v27 = vand.u32 2147483647, %v274_v45  ;;  %vm295_vm5 = vweird.f32 %v274_v45 }
  0xc2   :  { %v1985_v46 = vpop.eup %1579  ;;  %v277_v52 = vsub.f32 1.0, %v276_v47  ;;  %v349_v42 = vadd.f32 %v1992_v54, %v262_v29  ;;  %v61_v47 = vld [vmem:[#allocation2 + $0x28] sm:$0xff] }
  0xc3   :  { %v1582_v50 = vpop.eup %1581  ;;  %v316_v55 = vmul.f32 %v1985_v46, %v1982_v40  ;;  %v302_v34 = vor.u32 1.1754944e-38, %v301_v23  ;;  %vm321_vm8 = vweird.f32 %v1985_v46  ;;  %vm300_vm9 = vcmp.eq.f32.partialorder %v299_v27, 8.507059e+37  ;;  %v366_v23 = vld [vmem:[#allocation2 + $0x38] sm:$0xff] }
  0xc4   :  { %v1987_v51 = vadd.f32 1.0, %v1582_v50  ;;  %v278_v60 = vmul.f32 %v1578_v43, %v277_v52  ;;  %v324_v52 = vand.u32 2147483647, %v1982_v40  ;;  %vm322_vm11 = vmor %vm320_vm6, %vm321_vm8 }
  0xc5   :  { %v317_v6 = vsub.f32 1.0, %v316_v55 }
  0xc6   :  { %1585 = vrcp.f32 %v1987_v51  ;;  %v279_v63 = vadd.f32 %v1578_v43, %v278_v60  ;;  %v341_v56 = vand.u32 2147483648, %v1987_v51  ;;  %vm335_vm12 = vweird.f32 %v1987_v51 }
  0xc7   :  { %v1584_v1 = vpop.eup %1583  ;;  %v318_v24 = vmul.f32 %v1985_v46, %v317_v6  ;;  %v339_v60 = vand.u32 2147483647, %v1987_v51  ;;  %vm325_vm14 = vcmp.eq.f32.partialorder %v324_v52, 8.507059e+37 }
  0xc8   :  { %v283_v12 = vsel %vm282_vm2, %v1578_v43, %v279_v63  ;;  %v291_v13 = vmul.f32 %v1584_v1, %v274_v45  ;;  %vm296_vm4 = vweird.f32 %v1584_v1  ;;  %v326_v43 = vand.u32 2147483648, %v1982_v40 }
  0xc9   :  { %v288_v14 = vsel %vm285_vm3, %v287_v8, %v283_v12  ;;  %vm297_vm7 = vmor %vm295_vm5, %vm296_vm4  ;;  %v319_v36 = vadd.f32 %v1985_v46, %v318_v24  ;;  %v342_v6 = vor.u32 1.1754944e-38, %v341_v56  ;;  %vm340_vm15 = vcmp.eq.f32.partialorder %v339_v60, 8.507059e+37 }
  0xca   :  { %v350_v16 = vmul.f32 %v348_v0, %v288_v14  ;;  %v292_v17 = vsub.f32 1.0, %v291_v13  ;;  %v327_v63 = vor.u32 1.1754944e-38, %v326_v43 }
  0xcb   :  { %v323_v59 = vsel %vm322_vm11, %v1985_v46, %v319_v36 }
  0xcc   :  { %v1586_v15 = vpop.eup %1585  ;;  %v293_v25 = vmul.f32 %v1584_v1, %v292_v17  ;;  %v352_v32 = vadd.f32 %v350_v16, %v58_v21 }
  0xcd   :  { %v331_v20 = vmul.f32 %v1586_v15, %v1987_v51  ;;  %vm336_vm10 = vweird.f32 %v1586_v15 }
  0xce   :  { %v294_v33 = vadd.f32 %v1584_v1, %v293_v25  ;;  %1587 = vtanh.f32 %v352_v32  ;;  %vm337_vm13 = vmor %vm335_vm12, %vm336_vm10  ;;  %v369_v32 = vld [vmem:[#allocation2 + $0x50] sm:$0xff] }
  0xcf   :  { %v332_v28 = vsub.f32 1.0, %v331_v20 }
  0xd0   :  { %v298_v38 = vsel %vm297_vm7, %v1584_v1, %v294_v33  ;;  %v328_v1 = vsel %vm325_vm14, %v327_v63, %v323_v59 }
  0xd1   :  { %v333_v37 = vmul.f32 %v1586_v15, %v332_v28  ;;  %v303_v50 = vsel %vm300_vm9, %v302_v34, %v298_v38  ;;  %v356_v12 = vsub.f32 1.0, %v328_v1  ;;  %v360_v17 = vmul.f32 0.0, %v328_v1  ;;  %v365_v28 = vld [vmem:[#allocation2 + $0x30] sm:$0xff] }
  0xd2   :  { %v351_v55 = vmul.f32 %v349_v42, %v303_v50  ;;  %v368_v42 = vld [vmem:[#allocation2 + $0x48] sm:$0xff] }
  0xd3   :  { %v334_v45 = vadd.f32 %v1586_v15, %v333_v37 }
  0xd4   :  { %v353_v61 = vadd.f32 %v351_v55, %v61_v47  ;;  %v1588_v8 = vpop.eup %1587 }
  0xd5   :  { %v338_v0 = vsel %vm337_vm13, %v1586_v15, %v334_v45  ;;  %v358_v14 = vmul.f32 %v1588_v8, %v356_v12 }
  0xd6   :  { %1589 = vtanh.f32 %v353_v61  ;;  %v343_v40 = vsel %vm340_vm15, %v342_v6, %v338_v0 }
  0xd7   :  { %v357_v13 = vsub.f32 1.0, %v343_v40  ;;  %v361_v20 = vmul.f32 0.0, %v343_v40  ;;  %v2012_v21 = vadd.f32 %v360_v17, %v358_v14 }
  0xdc   :  { %v1590_v16 = vpop.eup %1589 }
  0xdd   :  { %v359_v46 = vmul.f32 %v1590_v16, %v357_v13 }
  0xdf   :  { %v2014_v51 = vadd.f32 %v361_v20, %v359_v46 }
  0xe1   :  { %v371_v15 = vpack.c.bf16 %v2014_v51, %v2012_v21 }
  0xe3   :  { %380 = vmatmul.bf16.vlgmr.msra.gmra.mxu3 %v371_v15  ;;  %394 = vmatmul.bf16.vlgmr.msrb.gmra.mxu0 %v371_v15 }
  0xe4   :  { %408 = vmatmul.bf16.vlgmr.msrb.gmra.mxu1 %v371_v15  ;;  %692 = vmatpush.bf16.msra.mxu3 %v1857_v18 }
  0xe5   :  { %810 = vmatpush.bf16.msrb.mxu0 %v1846_v3  ;;  %824 = vmatpush.bf16.msrb.mxu1 %v1848_v7 }
  0xe8   :  { %693 = vmatpush.bf16.msra.mxu3 %v1867_v26 }
  0xe9   :  { %811 = vmatpush.bf16.msrb.mxu0 %v1851_v10  ;;  %825 = vmatpush.bf16.msrb.mxu1 %v1855_v11 }
  0xec   :  { %694 = vmatpush.bf16.msra.mxu3 %v1877_v35 }
  0xed   :  { %812 = vmatpush.bf16.msrb.mxu0 %v1860_v19  ;;  %826 = vmatpush.bf16.msrb.mxu1 %v1864_v22 }
  0xf0   :  { %695 = vmatpush.bf16.msra.mxu3 %v1887_v44 }
  0xf1   :  { %813 = vmatpush.bf16.msrb.mxu0 %v1870_v30  ;;  %827 = vmatpush.bf16.msrb.mxu1 %v1874_v31 }
  0xf4   :  { %696 = vmatpush.bf16.msra.mxu3 %v1897_v53 }
  0xf5   :  { %814 = vmatpush.bf16.msrb.mxu0 %v1880_v39  ;;  %828 = vmatpush.bf16.msrb.mxu1 %v1884_v41 }
  0xf8   :  { %697 = vmatpush.bf16.msra.mxu3 %v1907_v62 }
  0xf9   :  { %815 = vmatpush.bf16.msrb.mxu0 %v1890_v48  ;;  %829 = vmatpush.bf16.msrb.mxu1 %v1894_v49 }
  0xfc   :  { %698 = vmatpush.bf16.msra.mxu3 %v1917_v5 }
  0xfd   :  { %816 = vmatpush.bf16.msrb.mxu0 %v1900_v57  ;;  %830 = vmatpush.bf16.msrb.mxu1 %v1904_v58 }
 0x100   :  { %699 = vmatpush.bf16.msra.mxu3 %v1923_v9 }
 0x101   :  { %817 = vmatpush.bf16.msrb.mxu0 %v1910_v2  ;;  %831 = vmatpush.bf16.msrb.mxu1 %v1914_v4 }
 0x160   :  { %v395_v24 = vpop.f32.mrf.mxu0 }
 0x161   :  { %v454_v25 = vadd.f32 %v395_v24, %v366_v23  ;;  %v409_v40 = vpop.f32.mrf.mxu1 }
 0x163   :  { %v1510_v27 = vmul.f32 -1.442695, %v454_v25  ;;  %v494_v25 = vadd.f32 %v1992_v54, %v409_v40  ;;  %v370_v40 = vld [vmem:[#allocation2 + $0x58] sm:$0xff] }
 0x165   :  { %1591 = vpow2.f32 %v1510_v27 }
 0x166   :  { %v381_v29 = vpop.f32.mrf.mxu3 }
 0x167   :  { %v414_v33 = vadd.f32 %v381_v29, %v365_v28 }
 0x168   :  { %v397_v34 = vpop.f32.mrf.mxu0 }
 0x169   :  { %v1508_v36 = vmul.f32 -1.442695, %v414_v33  ;;  %v455_v37 = vadd.f32 %v397_v34, %v369_v32 }
 0x16b   :  { %1593 = vpow2.f32 %v1508_v36  ;;  %v1511_v38 = vmul.f32 -1.442695, %v455_v37  ;;  %v1592_v43 = vpop.eup %1591  ;;  %v367_v37 = vld [vmem:[#allocation2 + $0x40] sm:$0xff] }
 0x16c   :  { %v2042_v45 = vadd.f32 1.0, %v1592_v43 }
 0x16d   :  { %1595 = vpow2.f32 %v1511_v38 }
 0x16e   :  { %v383_v47 = vpop.f32.mrf.mxu3  ;;  %vm469_vm9 = vweird.f32 %v2042_v45 }
 0x16f   :  { %v415_v50 = vadd.f32 %v383_v47, %v368_v42  ;;  %v411_v42 = vpop.f32.mrf.mxu1 }
 0x171   :  { %v1594_v52 = vpop.eup %1593  ;;  %v1509_v55 = vmul.f32 -1.442695, %v415_v50 }
 0x172   :  { %v422_v56 = vadd.f32 1.0, %v1594_v52 }
 0x173   :  { %v1596_v59 = vpop.eup %1595  ;;  %1597 = vpow2.f32 %v1509_v55 }
 0x174   :  { %1599 = vrcp.f32 %v422_v56  ;;  %v2045_v60 = vadd.f32 1.0, %v1596_v59  ;;  %v435_v14 = vand.u32 2147483648, %v422_v56  ;;  %v433_v46 = vand.u32 2147483647, %v422_v56 }
 0x175   :  { %1601 = vrcp.f32 %v2042_v45  ;;  %vm429_vm1 = vweird.f32 %v422_v56 }
 0x176   :  { %1603 = vrcp.f32 %v2045_v60  ;;  %v436_v24 = vor.u32 1.1754944e-38, %v435_v14  ;;  %vm434_vm3 = vcmp.eq.f32.partialorder %v433_v46, 8.507059e+37  ;;  %v490_v14 = vand.u32 2147483648, %v2045_v60 }
 0x177   :  { %vm484_vm12 = vweird.f32 %v2045_v60 }
 0x179   :  { %v1598_v61 = vpop.eup %1597 }
 0x17a   :  { %v1600_v63 = vpop.eup %1599  ;;  %v423_v0 = vadd.f32 1.0, %v1598_v61 }
 0x17b   :  { %v2048_v1 = vpop.eup %1601  ;;  %v425_v6 = vmul.f32 %v1600_v63, %v422_v56  ;;  %vm430_vm0 = vweird.f32 %v1600_v63  ;;  %v495_v56 = vadd.f32 %v1992_v54, %v411_v42 }
 0x17c   :  { %1605 = vrcp.f32 %v423_v0  ;;  %v2050_v8 = vpop.eup %1603  ;;  %v465_v13 = vmul.f32 %v2048_v1, %v2042_v45  ;;  %vm431_vm2 = vmor %vm429_vm1, %vm430_vm0  ;;  %v450_v36 = vand.u32 2147483648, %v423_v0  ;;  %v448_v47 = vand.u32 2147483647, %v423_v0 }
 0x17d   :  { %v426_v12 = vsub.f32 1.0, %v425_v6  ;;  %v480_v17 = vmul.f32 %v2050_v8, %v2045_v60  ;;  %vm444_vm5 = vweird.f32 %v423_v0  ;;  %vm470_vm7 = vweird.f32 %v2048_v1 }
 0x17e   :  { %v466_v23 = vsub.f32 1.0, %v465_v13  ;;  %v451_v59 = vor.u32 1.1754944e-38, %v450_v36  ;;  %vm449_vm8 = vcmp.eq.f32.partialorder %v448_v47, 8.507059e+37  ;;  %v475_v6 = vand.u32 2147483648, %v2042_v45  ;;  %vm471_vm11 = vmor %vm469_vm9, %vm470_vm7 }
 0x17f   :  { %v427_v16 = vmul.f32 %v1600_v63, %v426_v12  ;;  %v481_v29 = vsub.f32 1.0, %v480_v17  ;;  %v473_v13 = vand.u32 2147483647, %v2042_v45  ;;  %vm485_vm10 = vweird.f32 %v2050_v8 }
 0x180   :  { %v467_v38 = vmul.f32 %v2048_v1, %v466_v23  ;;  %v488_v17 = vand.u32 2147483647, %v2045_v60  ;;  %vm486_vm13 = vmor %vm484_vm12, %vm485_vm10 }
 0x181   :  { %v428_v20 = vadd.f32 %v1600_v63, %v427_v16  ;;  %v482_v50 = vmul.f32 %v2050_v8, %v481_v29  ;;  %vm474_vm14 = vcmp.eq.f32.partialorder %v473_v13, 8.507059e+37 }
 0x182   :  { %v1606_v15 = vpop.eup %1605  ;;  %v468_v61 = vadd.f32 %v2048_v1, %v467_v38  ;;  %vm489_vm15 = vcmp.eq.f32.partialorder %v488_v17, 8.507059e+37 }
 0x183   :  { %v432_v27 = vsel %vm431_vm2, %v1600_v63, %v428_v20  ;;  %v440_v28 = vmul.f32 %v1606_v15, %v423_v0  ;;  %vm445_vm4 = vweird.f32 %v1606_v15  ;;  %v483_v0 = vadd.f32 %v2050_v8, %v482_v50 }
 0x184   :  { %v437_v32 = vsel %vm434_vm3, %v436_v24, %v432_v27  ;;  %vm446_vm6 = vmor %vm444_vm5, %vm445_vm4  ;;  %v472_v46 = vsel %vm471_vm11, %v2048_v1, %v468_v61  ;;  %v476_v20 = vor.u32 1.1754944e-38, %v475_v6  ;;  %v491_v24 = vor.u32 1.1754944e-38, %v490_v14 }
 0x185   :  { %v441_v33 = vsub.f32 1.0, %v440_v28  ;;  %v496_v34 = vmul.f32 %v494_v25, %v437_v32  ;;  %v487_v45 = vsel %vm486_vm13, %v2050_v8, %v483_v0 }
 0x186   :  { %v477_v23 = vsel %vm474_vm14, %v476_v20, %v472_v46  ;;  %v492_v27 = vsel %vm489_vm15, %v491_v24, %v487_v45 }
 0x187   :  { %v442_v43 = vmul.f32 %v1606_v15, %v441_v33  ;;  %v498_v55 = vadd.f32 %v496_v34, %v367_v37  ;;  %v502_v28 = vsub.f32 1.0, %v477_v23  ;;  %v503_v29 = vsub.f32 1.0, %v492_v27 }
 0x188   :  { %v506_v34 = vmul.f32 %v477_v23, %v2012_v21  ;;  %v507_v60 = vmul.f32 %v492_v27, %v2014_v51  ;;  %v511_v21 = vld [vmem:[#allocation2 + $0x60] sm:$0xff]  ;;  %v512_v51 = vld [vmem:[#allocation2 + $0x68] sm:$0xff] }
 0x189   :  { %v443_v52 = vadd.f32 %v1606_v15, %v442_v43  ;;  %1607 = vtanh.f32 %v498_v55  ;;  %v514_v55 = vld [vmem:[#allocation2 + $0x78] sm:$0xff] }
 0x18b   :  { %v447_v63 = vsel %vm446_vm6, %v1606_v15, %v443_v52 }
 0x18c   :  { %v452_v12 = vsel %vm449_vm8, %v451_v59, %v447_v63 }
 0x18d   :  { %v497_v16 = vmul.f32 %v495_v56, %v452_v12  ;;  %v515_v56 = vld [vmem:[#allocation2 + $0x80] sm:$0xff] }
 0x18f   :  { %v499_v15 = vadd.f32 %v497_v16, %v370_v40  ;;  %v1608_v25 = vpop.eup %1607 }
 0x190   :  { %v504_v32 = vmul.f32 %v1608_v25, %v502_v28 }
 0x191   :  { %1609 = vtanh.f32 %v499_v15 }
 0x192   :  { %v2074_v36 = vadd.f32 %v506_v34, %v504_v32 }
 0x197   :  { %v1610_v1 = vpop.eup %1609 }
 0x198   :  { %v505_v33 = vmul.f32 %v1610_v1, %v503_v29 }
 0x19a   :  { %v2076_v37 = vadd.f32 %v507_v60, %v505_v33 }
 0x19c   :  { %v517_v8 = vpack.c.bf16 %v2076_v37, %v2074_v36 }
 0x19e   :  { %526 = vmatmul.bf16.vlgmr.msrb.gmra.mxu2 %v517_v8  ;;  %540 = vmatmul.bf16.vlgmr.msrb.gmra.mxu3 %v517_v8 }
 0x19f   :  { %554 = vmatmul.bf16.vlgmr.msra.gmra.mxu0 %v517_v8  ;;  %838 = vmatpush.bf16.msrb.mxu2 %v1857_v18 }
 0x1a0   :  { %956 = vmatpush.bf16.msrb.mxu3 %v1846_v3  ;;  %970 = vmatpush.bf16.msra.mxu0 %v1848_v7 }
 0x1a3   :  { %839 = vmatpush.bf16.msrb.mxu2 %v1867_v26 }
 0x1a4   :  { %957 = vmatpush.bf16.msrb.mxu3 %v1851_v10  ;;  %971 = vmatpush.bf16.msra.mxu0 %v1855_v11 }
 0x1a7   :  { %840 = vmatpush.bf16.msrb.mxu2 %v1877_v35 }
 0x1a8   :  { %958 = vmatpush.bf16.msrb.mxu3 %v1860_v19  ;;  %972 = vmatpush.bf16.msra.mxu0 %v1864_v22 }
 0x1ab   :  { %841 = vmatpush.bf16.msrb.mxu2 %v1887_v44 }
 0x1ac   :  { %959 = vmatpush.bf16.msrb.mxu3 %v1870_v30  ;;  %973 = vmatpush.bf16.msra.mxu0 %v1874_v31 }
 0x1af   :  { %842 = vmatpush.bf16.msrb.mxu2 %v1897_v53 }
 0x1b0   :  { %960 = vmatpush.bf16.msrb.mxu3 %v1880_v39  ;;  %974 = vmatpush.bf16.msra.mxu0 %v1884_v41 }
 0x1b3   :  { %843 = vmatpush.bf16.msrb.mxu2 %v1907_v62 }
 0x1b4   :  { %961 = vmatpush.bf16.msrb.mxu3 %v1890_v48  ;;  %975 = vmatpush.bf16.msra.mxu0 %v1894_v49 }
 0x1b7   :  { %844 = vmatpush.bf16.msrb.mxu2 %v1917_v5 }
 0x1b8   :  { %962 = vmatpush.bf16.msrb.mxu3 %v1900_v57  ;;  %976 = vmatpush.bf16.msra.mxu0 %v1904_v58 }
 0x1bb   :  { %845 = vmatpush.bf16.msrb.mxu2 %v1923_v9 }
 0x1bc   :  { %963 = vmatpush.bf16.msrb.mxu3 %v1910_v2  ;;  %977 = vmatpush.bf16.msra.mxu0 %v1914_v4 }
 0x21c   :  { %v555_v24 = vpop.f32.mrf.mxu0 }
 0x221   :  { %v527_v38 = vpop.f32.mrf.mxu2  ;;  %v541_v42 = vpop.f32.mrf.mxu3 }
 0x222   :  { %v560_v43 = vadd.f32 %v527_v38, %v511_v21  ;;  %v600_v47 = vadd.f32 %v541_v42, %v512_v51  ;;  %v640_v21 = vadd.f32 %v1992_v54, %v555_v24 }
 0x224   :  { %v1512_v50 = vmul.f32 -1.442695, %v560_v43  ;;  %v1514_v52 = vmul.f32 -1.442695, %v600_v47 }
 0x226   :  { %1611 = vpow2.f32 %v1512_v50 }
 0x227   :  { %1613 = vpow2.f32 %v1514_v52 }
 0x229   :  { %v529_v59 = vpop.f32.mrf.mxu2  ;;  %v543_v61 = vpop.f32.mrf.mxu3 }
 0x22a   :  { %v561_v63 = vadd.f32 %v529_v59, %v514_v55  ;;  %v601_v6 = vadd.f32 %v543_v61, %v515_v56  ;;  %v557_v55 = vpop.f32.mrf.mxu0  ;;  %v513_v61 = vld [vmem:[#allocation2 + $0x70] sm:$0xff] }
 0x22c   :  { %v1612_v40 = vpop.eup %1611  ;;  %v1513_v12 = vmul.f32 -1.442695, %v561_v63  ;;  %v1515_v14 = vmul.f32 -1.442695, %v601_v6 }
 0x22d   :  { %v1614_v13 = vpop.eup %1613  ;;  %v568_v0 = vadd.f32 1.0, %v1612_v40 }
 0x22e   :  { %v2104_v16 = vadd.f32 1.0, %v1614_v13  ;;  %1615 = vpow2.f32 %v1513_v12  ;;  %v641_v12 = vadd.f32 %v1992_v54, %v557_v55 }
 0x22f   :  { %1617 = vrcp.f32 %v568_v0  ;;  %v581_v28 = vand.u32 2147483648, %v568_v0  ;;  %v579_v1 = vand.u32 2147483647, %v568_v0  ;;  %vm575_vm1 = vweird.f32 %v568_v0 }
 0x230   :  { %1619 = vrcp.f32 %v2104_v16  ;;  %vm615_vm8 = vweird.f32 %v2104_v16 }
 0x231   :  { %1621 = vpow2.f32 %v1515_v14  ;;  %v582_v60 = vor.u32 1.1754944e-38, %v581_v28  ;;  %vm580_vm3 = vcmp.eq.f32.partialorder %v579_v1, 8.507059e+37  ;;  %v619_v28 = vand.u32 2147483647, %v2104_v16 }
 0x233   :  { %vm620_vm14 = vcmp.eq.f32.partialorder %v619_v28, 8.507059e+37 }
 0x234   :  { %v1616_v46 = vpop.eup %1615 }
 0x235   :  { %v1618_v17 = vpop.eup %1617  ;;  %v569_v20 = vadd.f32 1.0, %v1616_v46 }
 0x236   :  { %v2107_v15 = vpop.eup %1619  ;;  %v571_v45 = vmul.f32 %v1618_v17, %v568_v0  ;;  %vm576_vm0 = vweird.f32 %v1618_v17 }
 0x237   :  { %v1622_v23 = vpop.eup %1621  ;;  %1623 = vrcp.f32 %v569_v20  ;;  %v611_v29 = vmul.f32 %v2107_v15, %v2104_v16  ;;  %vm577_vm2 = vmor %vm575_vm1, %vm576_vm0  ;;  %v596_v56 = vand.u32 2147483648, %v569_v20  ;;  %v594_v6 = vand.u32 2147483647, %v569_v20 }
 0x238   :  { %v572_v25 = vsub.f32 1.0, %v571_v45  ;;  %v2109_v27 = vadd.f32 1.0, %v1622_v23  ;;  %vm590_vm5 = vweird.f32 %v569_v20  ;;  %vm616_vm6 = vweird.f32 %v2107_v15 }
 0x239   :  { %v612_v8 = vsub.f32 1.0, %v611_v29  ;;  %v597_v14 = vor.u32 1.1754944e-38, %v596_v56  ;;  %v621_v45 = vand.u32 2147483648, %v2104_v16  ;;  %vm595_vm9 = vcmp.eq.f32.partialorder %v594_v6, 8.507059e+37  ;;  %vm617_vm11 = vmor %vm615_vm8, %vm616_vm6  ;;  %v658_v6 = vld [vmem:[#allocation2 + $0x98] sm:$0xff] }
 0x23a   :  { %v573_v32 = vmul.f32 %v1618_v17, %v572_v25  ;;  %1625 = vrcp.f32 %v2109_v27  ;;  %v516_v25 = vld [vmem:[#allocation2 + $0x88] sm:$0xff]  ;;  %vm630_vm12 = vweird.f32 %v2109_v27 }
 0x23b   :  { %v613_v52 = vmul.f32 %v2107_v15, %v612_v8 }
 0x23c   :  { %v574_v33 = vadd.f32 %v1618_v17, %v573_v32  ;;  %v636_v32 = vand.u32 2147483648, %v2109_v27 }
 0x23d   :  { %v1624_v34 = vpop.eup %1623 }
 0x23e   :  { %v578_v51 = vsel %vm577_vm2, %v1618_v17, %v574_v33  ;;  %v586_v38 = vmul.f32 %v1624_v34, %v569_v20  ;;  %vm591_vm4 = vweird.f32 %v1624_v34  ;;  %v614_v17 = vadd.f32 %v2107_v15, %v613_v52 }
 0x23f   :  { %v583_v42 = vsel %vm580_vm3, %v582_v60, %v578_v51  ;;  %vm592_vm7 = vmor %vm590_vm5, %vm591_vm4  ;;  %v634_v33 = vand.u32 2147483647, %v2109_v27  ;;  %v622_v60 = vor.u32 1.1754944e-38, %v621_v45 }
 0x240   :  { %v1626_v43 = vpop.eup %1625  ;;  %v642_v47 = vmul.f32 %v640_v21, %v583_v42  ;;  %v587_v50 = vsub.f32 1.0, %v586_v38  ;;  %v618_v1 = vsel %vm617_vm11, %v2107_v15, %v614_v17  ;;  %v637_v21 = vor.u32 1.1754944e-38, %v636_v32 }
 0x241   :  { %v626_v59 = vmul.f32 %v1626_v43, %v2109_v27  ;;  %vm631_vm10 = vweird.f32 %v1626_v43  ;;  %v623_v51 = vsel %vm620_vm14, %v622_v60, %v618_v1  ;;  %vm635_vm15 = vcmp.eq.f32.partialorder %v634_v33, 8.507059e+37 }
 0x242   :  { %v588_v63 = vmul.f32 %v1624_v34, %v587_v50  ;;  %v644_v0 = vadd.f32 %v642_v47, %v513_v61  ;;  %vm632_vm13 = vmor %vm630_vm12, %vm631_vm10  ;;  %v648_v42 = vsub.f32 1.0, %v623_v51  ;;  %v652_v15 = vmul.f32 %v623_v51, %v2074_v36  ;;  %v657_v36 = vld [vmem:[#allocation2 + $0x90] sm:$0xff] }
 0x243   :  { %v627_v40 = vsub.f32 1.0, %v626_v59 }
 0x244   :  { %v589_v13 = vadd.f32 %v1624_v34, %v588_v63  ;;  %1627 = vtanh.f32 %v644_v0 }
 0x245   :  { %v628_v46 = vmul.f32 %v1626_v43, %v627_v40 }
 0x246   :  { %v593_v23 = vsel %vm592_vm7, %v1624_v34, %v589_v13 }
 0x247   :  { %v598_v24 = vsel %vm595_vm9, %v597_v14, %v593_v23  ;;  %v629_v20 = vadd.f32 %v1626_v43, %v628_v46 }
 0x248   :  { %v643_v29 = vmul.f32 %v641_v12, %v598_v24  ;;  %v660_v12 = vld [vmem:[#allocation2 + $0xa8] sm:$0xff]  ;;  %v661_v24 = vld [vmem:[#allocation2 + $0xb0] sm:$0xff] }
 0x249   :  { %v633_v8 = vsel %vm632_vm13, %v1626_v43, %v629_v20 }
 0x24a   :  { %v645_v34 = vadd.f32 %v643_v29, %v516_v25  ;;  %v1628_v16 = vpop.eup %1627  ;;  %v638_v38 = vsel %vm635_vm15, %v637_v21, %v633_v8 }
 0x24b   :  { %v649_v47 = vsub.f32 1.0, %v638_v38  ;;  %v650_v50 = vmul.f32 %v1628_v16, %v648_v42  ;;  %v653_v27 = vmul.f32 %v638_v38, %v2076_v37 }
 0x24c   :  { %1629 = vtanh.f32 %v645_v34 }
 0x24d   :  { %v2129_v56 = vadd.f32 %v652_v15, %v650_v50 }
 0x252   :  { %v1630_v52 = vpop.eup %1629 }
 0x253   :  { %v651_v55 = vmul.f32 %v1630_v52, %v649_v47 }
 0x255   :  { %v2131_v59 = vadd.f32 %v653_v27, %v651_v55 }
 0x257   :  { %v663_v43 = vpack.c.bf16 %v2131_v59, %v2129_v56 }
 0x259   :  { %672 = vmatmul.bf16.vlgmr.msra.gmra.mxu1 %v663_v43  ;;  %686 = vmatmul.bf16.vlgmr.msra.gmra.mxu2 %v663_v43 }
 0x25a   :  { %700 = vmatmul.bf16.vlgmr.msra.gmra.mxu3 %v663_v43  ;;  %984 = vmatpush.bf16.msra.mxu1 %v1857_v18 }
 0x25b   :  { %1102 = vmatpush.bf16.msra.mxu2 %v1846_v3  ;;  %1116 = vmatpush.bf16.msra.mxu3 %v1848_v7 }
 0x25e   :  { %985 = vmatpush.bf16.msra.mxu1 %v1867_v26 }
 0x25f   :  { %1103 = vmatpush.bf16.msra.mxu2 %v1851_v10  ;;  %1117 = vmatpush.bf16.msra.mxu3 %v1855_v11 }
 0x262   :  { %986 = vmatpush.bf16.msra.mxu1 %v1877_v35 }
 0x263   :  { %1104 = vmatpush.bf16.msra.mxu2 %v1860_v19  ;;  %1118 = vmatpush.bf16.msra.mxu3 %v1864_v22 }
 0x266   :  { %987 = vmatpush.bf16.msra.mxu1 %v1887_v44 }
 0x267   :  { %1105 = vmatpush.bf16.msra.mxu2 %v1870_v30  ;;  %1119 = vmatpush.bf16.msra.mxu3 %v1874_v31 }
 0x26a   :  { %988 = vmatpush.bf16.msra.mxu1 %v1897_v53 }
 0x26b   :  { %1106 = vmatpush.bf16.msra.mxu2 %v1880_v39  ;;  %1120 = vmatpush.bf16.msra.mxu3 %v1884_v41 }
 0x26e   :  { %989 = vmatpush.bf16.msra.mxu1 %v1907_v62 }
 0x26f   :  { %1107 = vmatpush.bf16.msra.mxu2 %v1890_v48  ;;  %1121 = vmatpush.bf16.msra.mxu3 %v1894_v49 }
 0x272   :  { %990 = vmatpush.bf16.msra.mxu1 %v1917_v5 }
 0x273   :  { %1108 = vmatpush.bf16.msra.mxu2 %v1900_v57  ;;  %1122 = vmatpush.bf16.msra.mxu3 %v1904_v58 }
 0x276   :  { %991 = vmatpush.bf16.msra.mxu1 %v1923_v9 }
 0x277   :  { %1109 = vmatpush.bf16.msra.mxu2 %v1910_v2  ;;  %1123 = vmatpush.bf16.msra.mxu3 %v1914_v4 }
 0x2d6   :  { %v673_v37 = vpop.f32.mrf.mxu1 }
 0x2d7   :  { %v706_v61 = vadd.f32 %v673_v37, %v657_v36 }
 0x2d9   :  { %v1516_v63 = vmul.f32 -1.442695, %v706_v61 }
 0x2db   :  { %1631 = vpow2.f32 %v1516_v63 }
 0x2dc   :  { %v687_v40 = vpop.f32.mrf.mxu2 }
 0x2dd   :  { %v746_v13 = vadd.f32 %v687_v40, %v658_v6  ;;  %v701_v8 = vpop.f32.mrf.mxu3 }
 0x2de   :  { %v675_v0 = vpop.f32.mrf.mxu1  ;;  %v786_v43 = vadd.f32 %v1992_v54, %v701_v8 }
 0x2df   :  { %v1518_v14 = vmul.f32 -1.442695, %v746_v13  ;;  %v707_v46 = vadd.f32 %v675_v0, %v660_v12  ;;  %v659_v13 = vld [vmem:[#allocation2 + $0xa0] sm:$0xff] }
 0x2e1   :  { %v1632_v17 = vpop.eup %1631  ;;  %1633 = vpow2.f32 %v1518_v14  ;;  %v1517_v45 = vmul.f32 -1.442695, %v707_v46 }
 0x2e2   :  { %v714_v23 = vadd.f32 1.0, %v1632_v17 }
 0x2e3   :  { %1635 = vpow2.f32 %v1517_v45 }
 0x2e4   :  { %1637 = vrcp.f32 %v714_v23  ;;  %v689_v25 = vpop.f32.mrf.mxu2  ;;  %v727_v51 = vand.u32 2147483648, %v714_v23  ;;  %v725_v42 = vand.u32 2147483647, %v714_v23  ;;  %vm721_vm1 = vweird.f32 %v714_v23 }
 0x2e5   :  { %v747_v28 = vadd.f32 %v689_v25, %v661_v24  ;;  %v703_v14 = vpop.f32.mrf.mxu3 }
 0x2e6   :  { %v728_v27 = vor.u32 1.1754944e-38, %v727_v51  ;;  %vm726_vm3 = vcmp.eq.f32.partialorder %v725_v42, 8.507059e+37 }
 0x2e7   :  { %v1634_v20 = vpop.eup %1633  ;;  %v1519_v29 = vmul.f32 -1.442695, %v747_v28 }
 0x2e8   :  { %v2159_v32 = vadd.f32 1.0, %v1634_v20  ;;  %v787_v20 = vadd.f32 %v1992_v54, %v703_v14 }
 0x2e9   :  { %v1636_v1 = vpop.eup %1635  ;;  %1639 = vpow2.f32 %v1519_v29 }
 0x2ea   :  { %v1638_v33 = vpop.eup %1637  ;;  %1641 = vrcp.f32 %v2159_v32  ;;  %v715_v60 = vadd.f32 1.0, %v1636_v1  ;;  %v767_v1 = vand.u32 2147483648, %v2159_v32  ;;  %vm761_vm9 = vweird.f32 %v2159_v32 }
 0x2eb   :  { %v717_v34 = vmul.f32 %v1638_v33, %v714_v23  ;;  %vm722_vm0 = vweird.f32 %v1638_v33 }
 0x2ec   :  { %1643 = vrcp.f32 %v715_v60  ;;  %vm723_vm2 = vmor %vm721_vm1, %vm722_vm0  ;;  %v742_v0 = vand.u32 2147483648, %v715_v60  ;;  %v740_v17 = vand.u32 2147483647, %v715_v60  ;;  %vm736_vm5 = vweird.f32 %v715_v60 }
 0x2ed   :  { %v718_v21 = vsub.f32 1.0, %v717_v34 }
 0x2ee   :  { %v743_v28 = vor.u32 1.1754944e-38, %v742_v0  ;;  %vm741_vm8 = vcmp.eq.f32.partialorder %v740_v17, 8.507059e+37 }
 0x2ef   :  { %v1640_v16 = vpop.eup %1639  ;;  %v719_v38 = vmul.f32 %v1638_v33, %v718_v21  ;;  %v662_v21 = vld [vmem:[#allocation2 + $0xb8] sm:$0xff] }
 0x2f0   :  { %v1642_v47 = vpop.eup %1641  ;;  %v755_v50 = vadd.f32 1.0, %v1640_v16  ;;  %v765_v16 = vand.u32 2147483647, %v2159_v32 }
 0x2f1   :  { %v757_v52 = vmul.f32 %v1642_v47, %v2159_v32  ;;  %v720_v55 = vadd.f32 %v1638_v33, %v719_v38  ;;  %vm762_vm6 = vweird.f32 %v1642_v47 }
 0x2f2   :  { %v1644_v15 = vpop.eup %1643  ;;  %1645 = vrcp.f32 %v755_v50  ;;  %v782_v8 = vand.u32 2147483648, %v755_v50  ;;  %vm2168_vm10 = vmor %vm761_vm9, %vm762_vm6  ;;  %vm776_vm12 = vweird.f32 %v755_v50  ;;  %vm766_vm14 = vcmp.eq.f32.partialorder %v765_v16, 8.507059e+37 }
 0x2f3   :  { %v758_v36 = vsub.f32 1.0, %v757_v52  ;;  %v724_v37 = vsel %vm723_vm2, %v1638_v33, %v720_v55  ;;  %v732_v61 = vmul.f32 %v1644_v15, %v715_v60  ;;  %vm737_vm4 = vweird.f32 %v1644_v15 }
 0x2f4   :  { %v729_v63 = vsel %vm726_vm3, %v728_v27, %v724_v37  ;;  %vm738_vm7 = vmor %vm736_vm5, %vm737_vm4  ;;  %v780_v52 = vand.u32 2147483647, %v755_v50  ;;  %v768_v55 = vor.u32 1.1754944e-38, %v767_v1 }
 0x2f5   :  { %v788_v6 = vmul.f32 %v786_v43, %v729_v63  ;;  %v733_v40 = vsub.f32 1.0, %v732_v61  ;;  %v759_v12 = vmul.f32 %v1642_v47, %v758_v36  ;;  %v783_v43 = vor.u32 1.1754944e-38, %v782_v8 }
 0x2f6   :  { %vm781_vm15 = vcmp.eq.f32.partialorder %v780_v52, 8.507059e+37 }
 0x2f7   :  { %v734_v46 = vmul.f32 %v1644_v15, %v733_v40  ;;  %v790_v23 = vadd.f32 %v788_v6, %v659_v13  ;;  %v760_v29 = vadd.f32 %v1642_v47, %v759_v12 }
 0x2f8   :  { %v1646_v45 = vpop.eup %1645 }
 0x2f9   :  { %v772_v24 = vmul.f32 %v1646_v45, %v755_v50  ;;  %v735_v25 = vadd.f32 %v1644_v15, %v734_v46  ;;  %1647 = vtanh.f32 %v790_v23  ;;  %vm777_vm11 = vweird.f32 %v1646_v45 }
 0x2fa   :  { %v764_v42 = vsel %vm2168_vm10, %v1642_v47, %v760_v29  ;;  %vm778_vm13 = vmor %vm776_vm12, %vm777_vm11 }
 0x2fb   :  { %v773_v33 = vsub.f32 1.0, %v772_v24  ;;  %v739_v34 = vsel %vm738_vm7, %v1644_v15, %v735_v25  ;;  %v769_v32 = vsel %vm766_vm14, %v768_v55, %v764_v42  ;;  %v2219_v55 = vld [vmem:[%s2337_s2] ss:$0 sm:$0xff]  ;;  %s1817_s2 = smov [#allocation7]  }
 0x2fc   :  { %v744_v51 = vsel %vm741_vm8, %v743_v28, %v739_v34  ;;  %v794_v63 = vsub.f32 1.0, %v769_v32  ;;  %v798_v47 = vmul.f32 %v769_v32, %v2129_v56  ;;  %s1392_s28 = sshll.u32 %s1817_s2, 4  ;;  %s1393_s28 = int_to_ptr.vmem [resolvable:$true] %s1392_s28 }
 0x2fd   :  { %v774_v38 = vmul.f32 %v1646_v45, %v773_v33  ;;  %v789_v54 = vmul.f32 %v787_v20, %v744_v51 }
 0x2ff   :  { %v791_v15 = vadd.f32 %v789_v54, %v662_v21  ;;  %v775_v27 = vadd.f32 %v1646_v45, %v774_v38  ;;  %v1648_v37 = vpop.eup %1647 }
 0x300   :  { %v796_v40 = vmul.f32 %v1648_v37, %v794_v63  ;;  %v805_v63 = vld [vmem:[#allocation2 + $0xd0] sm:$0xff] }
 0x301   :  { %1649 = vtanh.f32 %v791_v15  ;;  %v779_v36 = vsel %vm778_vm13, %v1646_v45, %v775_v27 }
 0x302   :  { %v784_v61 = vsel %vm781_vm15, %v783_v43, %v779_v36  ;;  %v2176_v0 = vadd.f32 %v798_v47, %v796_v40 }
 0x303   :  { %v795_v6 = vsub.f32 1.0, %v784_v61  ;;  %v799_v50 = vmul.f32 %v784_v61, %v2131_v59 }
 0x307   :  { %v1650_v12 = vpop.eup %1649 }
 0x308   :  { %v797_v13 = vmul.f32 %v1650_v12, %v795_v6 }
 0x30a   :  { %v2178_v14 = vadd.f32 %v799_v50, %v797_v13 }
 0x30c   :  { %v809_v46 = vpack.c.bf16 %v2178_v14, %v2176_v0 }
 0x30e   :  { %818 = vmatmul.bf16.vlgmr.msrb.gmra.mxu0 %v809_v46  ;;  %832 = vmatmul.bf16.vlgmr.msrb.gmra.mxu1 %v809_v46 }
 0x30f   :  { %846 = vmatmul.bf16.vlgmr.msrb.gmra.mxu2 %v809_v46  ;;  %1130 = vmatpush.bf16.msrb.mxu0 %v1857_v18 }
 0x310   :  { %1248 = vmatpush.bf16.msrb.mxu1 %v1846_v3  ;;  %1262 = vmatpush.bf16.msrb.mxu2 %v1848_v7  ;;  %v803_v3 = vld [vmem:[#allocation2 + $0xc0] sm:$0xff]  ;;  %v804_v7 = vld [vmem:[#allocation2 + $0xc8] sm:$0xff] }
 0x313   :  { %1131 = vmatpush.bf16.msrb.mxu0 %v1867_v26 }
 0x314   :  { %1249 = vmatpush.bf16.msrb.mxu1 %v1851_v10  ;;  %1263 = vmatpush.bf16.msrb.mxu2 %v1855_v11 }
 0x317   :  { %1132 = vmatpush.bf16.msrb.mxu0 %v1877_v35 }
 0x318   :  { %1250 = vmatpush.bf16.msrb.mxu1 %v1860_v19  ;;  %1264 = vmatpush.bf16.msrb.mxu2 %v1864_v22 }
 0x31b   :  { %1133 = vmatpush.bf16.msrb.mxu0 %v1887_v44 }
 0x31c   :  { %1251 = vmatpush.bf16.msrb.mxu1 %v1870_v30  ;;  %1265 = vmatpush.bf16.msrb.mxu2 %v1874_v31 }
 0x31f   :  { %1134 = vmatpush.bf16.msrb.mxu0 %v1897_v53 }
 0x320   :  { %1252 = vmatpush.bf16.msrb.mxu1 %v1880_v39  ;;  %1266 = vmatpush.bf16.msrb.mxu2 %v1884_v41  ;;  %v806_v39 = vld [vmem:[#allocation2 + $0xd8] sm:$0xff]  ;;  %v807_v41 = vld [vmem:[#allocation2 + $0xe0] sm:$0xff] }
 0x323   :  { %1135 = vmatpush.bf16.msrb.mxu0 %v1907_v62 }
 0x324   :  { %1253 = vmatpush.bf16.msrb.mxu1 %v1890_v48  ;;  %1267 = vmatpush.bf16.msrb.mxu2 %v1894_v49 }
 0x327   :  { %1136 = vmatpush.bf16.msrb.mxu0 %v1917_v5 }
 0x328   :  { %1254 = vmatpush.bf16.msrb.mxu1 %v1900_v57  ;;  %1268 = vmatpush.bf16.msrb.mxu2 %v1904_v58 }
 0x32b   :  { %1137 = vmatpush.bf16.msrb.mxu0 %v1923_v9 }
 0x32c   :  { %1255 = vmatpush.bf16.msrb.mxu1 %v1910_v2  ;;  %1269 = vmatpush.bf16.msrb.mxu2 %v1914_v4 }
 0x38b   :  { %v819_v10 = vpop.f32.mrf.mxu0  ;;  %v833_v11 = vpop.f32.mrf.mxu1 }
 0x38c   :  { %v852_v19 = vadd.f32 %v819_v10, %v803_v3  ;;  %v892_v22 = vadd.f32 %v833_v11, %v804_v7 }
 0x38e   :  { %v1520_v30 = vmul.f32 -1.442695, %v852_v19  ;;  %v1522_v31 = vmul.f32 -1.442695, %v892_v22 }
 0x390   :  { %1651 = vpow2.f32 %v1520_v30 }
 0x391   :  { %1653 = vpow2.f32 %v1522_v31  ;;  %v808_v31 = vld [vmem:[#allocation2 + $0xe8] sm:$0xff] }
 0x392   :  { %v847_v8 = vpop.f32.mrf.mxu2 }
 0x393   :  { %v821_v48 = vpop.f32.mrf.mxu0  ;;  %v835_v49 = vpop.f32.mrf.mxu1  ;;  %v932_v15 = vadd.f32 %v2219_v55, %v847_v8 }
 0x394   :  { %v853_v57 = vadd.f32 %v821_v48, %v806_v39  ;;  %v893_v58 = vadd.f32 %v835_v49, %v807_v41 }
 0x396   :  { %v1652_v56 = vpop.eup %1651  ;;  %v1521_v2 = vmul.f32 -1.442695, %v853_v57  ;;  %v1523_v17 = vmul.f32 -1.442695, %v893_v58 }
 0x397   :  { %v1654_v59 = vpop.eup %1653  ;;  %v860_v4 = vadd.f32 1.0, %v1652_v56 }
 0x398   :  { %v2206_v45 = vadd.f32 1.0, %v1654_v59  ;;  %1655 = vpow2.f32 %v1521_v2 }
 0x399   :  { %1657 = vrcp.f32 %v860_v4  ;;  %v873_v21 = vand.u32 2147483648, %v860_v4  ;;  %v871_v16 = vand.u32 2147483647, %v860_v4  ;;  %vm867_vm1 = vweird.f32 %v860_v4 }
 0x39a   :  { %1659 = vrcp.f32 %v2206_v45  ;;  %v849_v50 = vpop.f32.mrf.mxu2  ;;  %vm907_vm5 = vweird.f32 %v2206_v45  ;;  %v913_v19 = vand.u32 2147483648, %v2206_v45  ;;  %v911_v41 = vand.u32 2147483647, %v2206_v45 }
 0x39b   :  { %1661 = vpow2.f32 %v1523_v17  ;;  %v874_v42 = vor.u32 1.1754944e-38, %v873_v21  ;;  %vm872_vm3 = vcmp.eq.f32.partialorder %v871_v16, 8.507059e+37  ;;  %v933_v30 = vadd.f32 %v2219_v55, %v849_v50 }
 0x39c   :  { %v914_v2 = vor.u32 1.1754944e-38, %v913_v19  ;;  %vm912_vm14 = vcmp.eq.f32.partialorder %v911_v41, 8.507059e+37 }
 0x39e   :  { %v1656_v23 = vpop.eup %1655 }
 0x39f   :  { %v1658_v24 = vpop.eup %1657  ;;  %v861_v25 = vadd.f32 1.0, %v1656_v23 }
 0x3a0   :  { %v2209_v28 = vpop.eup %1659  ;;  %v863_v20 = vmul.f32 %v1658_v24, %v860_v4  ;;  %vm868_vm0 = vweird.f32 %v1658_v24 }
 0x3a1   :  { %v1662_v29 = vpop.eup %1661  ;;  %1663 = vrcp.f32 %v861_v25  ;;  %v903_v34 = vmul.f32 %v2209_v28, %v2206_v45  ;;  %vm869_vm2 = vmor %vm867_vm1, %vm868_vm0  ;;  %v888_v40 = vand.u32 2147483648, %v861_v25  ;;  %v886_v13 = vand.u32 2147483647, %v861_v25 }
 0x3a2   :  { %v864_v1 = vsub.f32 1.0, %v863_v20  ;;  %v2211_v33 = vadd.f32 1.0, %v1662_v29  ;;  %vm882_vm6 = vweird.f32 %v861_v25  ;;  %vm908_vm7 = vweird.f32 %v2209_v28 }
 0x3a3   :  { %v904_v54 = vsub.f32 1.0, %v903_v34  ;;  %v889_v10 = vor.u32 1.1754944e-38, %v888_v40  ;;  %vm887_vm9 = vcmp.eq.f32.partialorder %v886_v13, 8.507059e+37  ;;  %vm909_vm11 = vmor %vm907_vm5, %vm908_vm7 }
 0x3a4   :  { %v865_v51 = vmul.f32 %v1658_v24, %v864_v1  ;;  %1665 = vrcp.f32 %v2211_v33  ;;  %v928_v49 = vand.u32 2147483648, %v2211_v33  ;;  %vm922_vm12 = vweird.f32 %v2211_v33 }
 0x3a5   :  { %v905_v61 = vmul.f32 %v2209_v28, %v904_v54  ;;  %v926_v56 = vand.u32 2147483647, %v2211_v33  ;;  %v953_v54 = vld [vmem:[#allocation2 + $0x110] sm:$0xff] }
 0x3a6   :  { %v866_v60 = vadd.f32 %v1658_v24, %v865_v51  ;;  %v929_v17 = vor.u32 1.1754944e-38, %v928_v49 }
 0x3a7   :  { %v1664_v38 = vpop.eup %1663  ;;  %v906_v11 = vadd.f32 %v2209_v28, %v905_v61  ;;  %vm927_vm15 = vcmp.eq.f32.partialorder %v926_v56, 8.507059e+37 }
 0x3a8   :  { %v870_v52 = vsel %vm869_vm2, %v1658_v24, %v866_v60  ;;  %v878_v27 = vmul.f32 %v1664_v38, %v861_v25  ;;  %vm883_vm4 = vweird.f32 %v1664_v38 }
 0x3a9   :  { %v875_v43 = vsel %vm872_vm3, %v874_v42, %v870_v52  ;;  %vm884_vm8 = vmor %vm882_vm6, %vm883_vm4  ;;  %v910_v58 = vsel %vm909_vm11, %v2209_v28, %v906_v11  ;;  %v952_v52 = vld [vmem:[#allocation2 + $0x108] sm:$0xff] }
 0x3aa   :  { %v1666_v32 = vpop.eup %1665  ;;  %v934_v36 = vmul.f32 %v932_v15, %v875_v43  ;;  %v879_v37 = vsub.f32 1.0, %v878_v27  ;;  %v915_v23 = vsel %vm912_vm14, %v914_v2, %v910_v58 }
 0x3ab   :  { %v918_v6 = vmul.f32 %v1666_v32, %v2211_v33  ;;  %vm923_vm10 = vweird.f32 %v1666_v32  ;;  %v940_v25 = vsub.f32 1.0, %v915_v23  ;;  %v944_v28 = vmul.f32 %v915_v23, %v2176_v0  ;;  %v950_v0 = vld [vmem:[#allocation2 + $0xf8] sm:$0xff] }
 0x3ac   :  { %v880_v12 = vmul.f32 %v1664_v38, %v879_v37  ;;  %v936_v46 = vadd.f32 %v934_v36, %v805_v63  ;;  %vm924_vm13 = vmor %vm922_vm12, %vm923_vm10 }
 0x3ad   :  { %v919_v47 = vsub.f32 1.0, %v918_v6 }
 0x3ae   :  { %v881_v3 = vadd.f32 %v1664_v38, %v880_v12  ;;  %1667 = vtanh.f32 %v936_v46 }
 0x3af   :  { %v920_v7 = vmul.f32 %v1666_v32, %v919_v47 }
 0x3b0   :  { %v885_v22 = vsel %vm884_vm8, %v1664_v38, %v881_v3  ;;  %v949_v38 = vld [vmem:[#allocation2 + $0xf0] sm:$0xff] }
 0x3b1   :  { %v890_v39 = vsel %vm887_vm9, %v889_v10, %v885_v22  ;;  %v921_v48 = vadd.f32 %v1666_v32, %v920_v7 }
 0x3b2   :  { %v935_v57 = vmul.f32 %v933_v30, %v890_v39 }
 0x3b3   :  { %v925_v4 = vsel %vm924_vm13, %v1666_v32, %v921_v48 }
 0x3b4   :  { %v937_v59 = vadd.f32 %v935_v57, %v808_v31  ;;  %v1668_v45 = vpop.eup %1667  ;;  %v930_v24 = vsel %vm927_vm15, %v929_v17, %v925_v4  ;;  %v951_v4 = vld [vmem:[#allocation2 + $0x100] sm:$0xff] }
 0x3b5   :  { %v941_v20 = vsub.f32 1.0, %v930_v24  ;;  %v942_v29 = vmul.f32 %v1668_v45, %v940_v25  ;;  %v945_v33 = vmul.f32 %v930_v24, %v2178_v14 }
 0x3b6   :  { %1669 = vtanh.f32 %v937_v59 }
 0x3b7   :  { %v2238_v8 = vadd.f32 %v944_v28, %v942_v29 }
 0x3bc   :  { %v1670_v1 = vpop.eup %1669 }
 0x3bd   :  { %v943_v34 = vmul.f32 %v1670_v1, %v941_v20 }
 0x3bf   :  { %v2240_v21 = vadd.f32 %v945_v33, %v943_v34 }
 0x3c1   :  { %v955_v51 = vpack.c.bf16 %v2240_v21, %v2238_v8 }
 0x3c3   :  { %964 = vmatmul.bf16.vlgmr.msrb.gmra.mxu3 %v955_v51  ;;  %978 = vmatmul.bf16.vlgmr.msra.gmra.mxu0 %v955_v51 }
 0x3c4   :  { %992 = vmatmul.bf16.vlgmr.msra.gmra.mxu1 %v955_v51  ;;  %1276 = vmatpush.bf16.msrb.mxu3 %v1857_v18 }
 0x3c8   :  { %1277 = vmatpush.bf16.msrb.mxu3 %v1867_v26 }
 0x3cc   :  { %1278 = vmatpush.bf16.msrb.mxu3 %v1877_v35 }
 0x3d0   :  { %1279 = vmatpush.bf16.msrb.mxu3 %v1887_v44 }
 0x3d4   :  { %1280 = vmatpush.bf16.msrb.mxu3 %v1897_v53 }
 0x3d8   :  { %1281 = vmatpush.bf16.msrb.mxu3 %v1907_v62 }
 0x3dc   :  { %1282 = vmatpush.bf16.msrb.mxu3 %v1917_v5 }
 0x3e0   :  { %1283 = vmatpush.bf16.msrb.mxu3 %v1923_v9 }
 0x440   :  { %v979_v14 = vpop.f32.mrf.mxu0 }
 0x441   :  { %v1038_v16 = vadd.f32 %v979_v14, %v950_v0  ;;  %v993_v47 = vpop.f32.mrf.mxu1  ;;  %v954_v0 = vld [vmem:[#allocation2 + $0x118] sm:$0xff] }
 0x442   :  { %v1078_v39 = vadd.f32 %v2219_v55, %v993_v47 }
 0x443   :  { %v1526_v60 = vmul.f32 -1.442695, %v1038_v16 }
 0x445   :  { %1671 = vpow2.f32 %v1526_v60 }
 0x446   :  { %v965_v18 = vpop.f32.mrf.mxu3 }
 0x447   :  { %v998_v26 = vadd.f32 %v965_v18, %v949_v38 }
 0x448   :  { %v981_v35 = vpop.f32.mrf.mxu0 }
 0x449   :  { %v1524_v42 = vmul.f32 -1.442695, %v998_v26  ;;  %v1039_v44 = vadd.f32 %v981_v35, %v953_v54  ;;  %v995_v17 = vpop.f32.mrf.mxu1 }
 0x44a   :  { %v1079_v29 = vadd.f32 %v2219_v55, %v995_v17 }
 0x44b   :  { %1673 = vpow2.f32 %v1524_v42  ;;  %v1527_v53 = vmul.f32 -1.442695, %v1039_v44  ;;  %v1672_v62 = vpop.eup %1671 }
 0x44c   :  { %v2252_v27 = vadd.f32 1.0, %v1672_v62 }
 0x44d   :  { %1675 = vpow2.f32 %v1527_v53 }
 0x44e   :  { %v967_v5 = vpop.f32.mrf.mxu3  ;;  %vm1053_vm8 = vweird.f32 %v2252_v27  ;;  %v1059_v28 = vand.u32 2147483648, %v2252_v27  ;;  %v1057_v14 = vand.u32 2147483647, %v2252_v27 }
 0x44f   :  { %v999_v15 = vadd.f32 %v967_v5, %v952_v52 }
 0x450   :  { %v1060_v26 = vor.u32 1.1754944e-38, %v1059_v28  ;;  %vm1058_vm14 = vcmp.eq.f32.partialorder %v1057_v14, 8.507059e+37 }
 0x451   :  { %v1674_v9 = vpop.eup %1673  ;;  %v1525_v43 = vmul.f32 -1.442695, %v999_v15 }
 0x452   :  { %v1006_v32 = vadd.f32 1.0, %v1674_v9 }
 0x453   :  { %v1676_v36 = vpop.eup %1675  ;;  %1677 = vpow2.f32 %v1525_v43 }
 0x454   :  { %1679 = vrcp.f32 %v1006_v32  ;;  %v2255_v37 = vadd.f32 1.0, %v1676_v36  ;;  %v1019_v3 = vand.u32 2147483648, %v1006_v32  ;;  %v1017_v10 = vand.u32 2147483647, %v1006_v32 }
 0x455   :  { %1681 = vrcp.f32 %v2252_v27  ;;  %vm1013_vm1 = vweird.f32 %v1006_v32 }
 0x456   :  { %1683 = vrcp.f32 %v2255_v37  ;;  %v1020_v31 = vor.u32 1.1754944e-38, %v1019_v3  ;;  %vm1018_vm3 = vcmp.eq.f32.partialorder %v1017_v10, 8.507059e+37  ;;  %v1074_v60 = vand.u32 2147483648, %v2255_v37  ;;  %v1099_v3 = vld [vmem:[#allocation2 + $0x140] sm:$0xff] }
 0x457   :  { %vm1068_vm12 = vweird.f32 %v2255_v37  ;;  %v1072_v54 = vand.u32 2147483647, %v2255_v37 }
 0x458   :  { %v1075_v44 = vor.u32 1.1754944e-38, %v1074_v60 }
 0x459   :  { %v1678_v61 = vpop.eup %1677  ;;  %vm1073_vm15 = vcmp.eq.f32.partialorder %v1072_v54, 8.507059e+37 }
 0x45a   :  { %v1680_v63 = vpop.eup %1679  ;;  %v1007_v6 = vadd.f32 1.0, %v1678_v61 }
 0x45b   :  { %v2258_v40 = vpop.eup %1681  ;;  %v1009_v12 = vmul.f32 %v1680_v63, %v1006_v32  ;;  %vm1014_vm0 = vweird.f32 %v1680_v63 }
 0x45c   :  { %1685 = vrcp.f32 %v1007_v6  ;;  %v2260_v13 = vpop.eup %1683  ;;  %v1049_v46 = vmul.f32 %v2258_v40, %v2252_v27  ;;  %vm1015_vm2 = vmor %vm1013_vm1, %vm1014_vm0  ;;  %v1034_v59 = vand.u32 2147483648, %v1007_v6  ;;  %v1032_v45 = vand.u32 2147483647, %v1007_v6 }
 0x45d   :  { %v1010_v50 = vsub.f32 1.0, %v1009_v12  ;;  %v1064_v11 = vmul.f32 %v2260_v13, %v2255_v37  ;;  %vm1028_vm5 = vweird.f32 %v1007_v6  ;;  %vm1054_vm6 = vweird.f32 %v2258_v40 }
 0x45e   :  { %v1050_v30 = vsub.f32 1.0, %v1049_v46  ;;  %v1035_v1 = vor.u32 1.1754944e-38, %v1034_v59  ;;  %vm1033_vm9 = vcmp.eq.f32.partialorder %v1032_v45, 8.507059e+37  ;;  %vm1069_vm10 = vweird.f32 %v2260_v13  ;;  %vm1055_vm11 = vmor %vm1053_vm8, %vm1054_vm6 }
 0x45f   :  { %v1011_v7 = vmul.f32 %v1680_v63, %v1010_v50  ;;  %v1065_v57 = vsub.f32 1.0, %v1064_v11  ;;  %vm1070_vm13 = vmor %vm1068_vm12, %vm1069_vm10 }
 0x460   :  { %v1051_v2 = vmul.f32 %v2258_v40, %v1050_v30 }
 0x461   :  { %v1012_v19 = vadd.f32 %v1680_v63, %v1011_v7  ;;  %v1066_v24 = vmul.f32 %v2260_v13, %v1065_v57 }
 0x462   :  { %v1686_v22 = vpop.eup %1685  ;;  %v1052_v34 = vadd.f32 %v2258_v40, %v1051_v2 }
 0x463   :  { %v1016_v41 = vsel %vm1015_vm2, %v1680_v63, %v1012_v19  ;;  %v1024_v48 = vmul.f32 %v1686_v22, %v1007_v6  ;;  %vm1029_vm4 = vweird.f32 %v1686_v22  ;;  %v1067_v16 = vadd.f32 %v2260_v13, %v1066_v24  ;;  %v1095_v6 = vld [vmem:[#allocation2 + $0x120] sm:$0xff] }
 0x464   :  { %v1021_v49 = vsel %vm1018_vm3, %v1020_v31, %v1016_v41  ;;  %vm1030_vm7 = vmor %vm1028_vm5, %vm1029_vm4  ;;  %v1056_v18 = vsel %vm1055_vm11, %v2258_v40, %v1052_v34  ;;  %v1096_v40 = vld [vmem:[#allocation2 + $0x128] sm:$0xff] }
 0x465   :  { %v1080_v58 = vmul.f32 %v1078_v39, %v1021_v49  ;;  %v1025_v56 = vsub.f32 1.0, %v1024_v48  ;;  %v1071_v42 = vsel %vm1070_vm13, %v2260_v13, %v1067_v16  ;;  %v1061_v53 = vsel %vm1058_vm14, %v1060_v26, %v1056_v18 }
 0x466   :  { %v1076_v62 = vsel %vm1073_vm15, %v1075_v44, %v1071_v42  ;;  %v1086_v5 = vsub.f32 1.0, %v1061_v53  ;;  %v1090_v32 = vmul.f32 %v1061_v53, %v2238_v8  ;;  %v1097_v42 = vld [vmem:[#allocation2 + $0x130] sm:$0xff] }
 0x467   :  { %v1026_v23 = vmul.f32 %v1686_v22, %v1025_v56  ;;  %v1082_v20 = vadd.f32 %v1080_v58, %v951_v4  ;;  %v1087_v15 = vsub.f32 1.0, %v1076_v62  ;;  %v1091_v36 = vmul.f32 %v1076_v62, %v2240_v21  ;;  %v1098_v21 = vld [vmem:[#allocation2 + $0x138] sm:$0xff] }
 0x469   :  { %v1027_v25 = vadd.f32 %v1686_v22, %v1026_v23  ;;  %1687 = vtanh.f32 %v1082_v20 }
 0x46b   :  { %v1031_v33 = vsel %vm1030_vm7, %v1686_v22, %v1027_v25 }
 0x46c   :  { %v1036_v51 = vsel %vm1033_vm9, %v1035_v1, %v1031_v33 }
 0x46d   :  { %v1081_v38 = vmul.f32 %v1079_v29, %v1036_v51 }
 0x46f   :  { %v1083_v35 = vadd.f32 %v1081_v38, %v954_v0  ;;  %v1688_v52 = vpop.eup %1687 }
 0x470   :  { %v1088_v9 = vmul.f32 %v1688_v52, %v1086_v5 }
 0x471   :  { %1689 = vtanh.f32 %v1083_v35 }
 0x472   :  { %v2284_v37 = vadd.f32 %v1090_v32, %v1088_v9 }
 0x477   :  { %v1690_v27 = vpop.eup %1689 }
 0x478   :  { %v1089_v43 = vmul.f32 %v1690_v27, %v1087_v15 }
 0x47a   :  { %v2286_v61 = vadd.f32 %v1091_v36, %v1089_v43 }
 0x47c   :  { %v1101_v63 = vpack.c.bf16 %v2286_v61, %v2284_v37 }
 0x47e   :  { %1110 = vmatmul.bf16.vlgmr.msra.gmra.mxu2 %v1101_v63  ;;  %1124 = vmatmul.bf16.vlgmr.msra.gmra.mxu3 %v1101_v63 }
 0x47f   :  { %1138 = vmatmul.bf16.vlgmr.msrb.gmra.mxu0 %v1101_v63 }
 0x4fc   :  { %v1139_v4 = vpop.f32.mrf.mxu0 }
 0x4fd   :  { %v1224_v33 = vadd.f32 %v2219_v55, %v1139_v4 }
 0x501   :  { %v1111_v12 = vpop.f32.mrf.mxu2  ;;  %v1125_v13 = vpop.f32.mrf.mxu3 }
 0x502   :  { %v1144_v47 = vadd.f32 %v1111_v12, %v1095_v6  ;;  %v1184_v50 = vadd.f32 %v1125_v13, %v1096_v40  ;;  %v1100_v6 = vld [vmem:[#allocation2 + $0x148] sm:$0xff] }
 0x504   :  { %v1528_v46 = vmul.f32 -1.442695, %v1144_v47  ;;  %v1530_v8 = vmul.f32 -1.442695, %v1184_v50  ;;  %v1141_v54 = vpop.f32.mrf.mxu0 }
 0x505   :  { %v1225_v62 = vadd.f32 %v2219_v55, %v1141_v54 }
 0x506   :  { %1691 = vpow2.f32 %v1528_v46 }
 0x507   :  { %1693 = vpow2.f32 %v1530_v8 }
 0x509   :  { %v1113_v7 = vpop.f32.mrf.mxu2  ;;  %v1127_v10 = vpop.f32.mrf.mxu3 }
 0x50a   :  { %v1145_v11 = vadd.f32 %v1113_v7, %v1098_v21  ;;  %v1185_v19 = vadd.f32 %v1127_v10, %v1099_v3 }
 0x50c   :  { %v1692_v22 = vpop.eup %1691  ;;  %v1529_v30 = vmul.f32 -1.442695, %v1145_v11  ;;  %v1531_v41 = vmul.f32 -1.442695, %v1185_v19 }
 0x50d   :  { %v1694_v31 = vpop.eup %1693  ;;  %v1152_v39 = vadd.f32 1.0, %v1692_v22 }
 0x50e   :  { %v2290_v48 = vadd.f32 1.0, %v1694_v31  ;;  %1695 = vpow2.f32 %v1529_v30 }
 0x50f   :  { %1697 = vrcp.f32 %v1152_v39  ;;  %v1165_v45 = vand.u32 2147483648, %v1152_v39  ;;  %v1163_v20 = vand.u32 2147483647, %v1152_v39  ;;  %vm1159_vm1 = vweird.f32 %v1152_v39 }
 0x510   :  { %1699 = vrcp.f32 %v2290_v48  ;;  %vm1199_vm8 = vweird.f32 %v2290_v48  ;;  %v1205_v32 = vand.u32 2147483648, %v2290_v48  ;;  %v1203_v40 = vand.u32 2147483647, %v2290_v48 }
 0x511   :  { %1701 = vpow2.f32 %v1531_v41  ;;  %v1166_v34 = vor.u32 1.1754944e-38, %v1165_v45  ;;  %vm1164_vm3 = vcmp.eq.f32.partialorder %v1163_v20, 8.507059e+37 }
 0x512   :  { %v1206_v8 = vor.u32 1.1754944e-38, %v1205_v32  ;;  %vm1204_vm14 = vcmp.eq.f32.partialorder %v1203_v40, 8.507059e+37 }
 0x514   :  { %v1696_v49 = vpop.eup %1695 }
 0x515   :  { %v1698_v57 = vpop.eup %1697  ;;  %v1153_v58 = vadd.f32 1.0, %v1696_v49 }
 0x516   :  { %v2293_v56 = vpop.eup %1699  ;;  %v1155_v2 = vmul.f32 %v1698_v57, %v1152_v39  ;;  %vm1160_vm0 = vweird.f32 %v1698_v57 }
 0x517   :  { %v1702_v59 = vpop.eup %1701  ;;  %1703 = vrcp.f32 %v1153_v58  ;;  %v1195_v24 = vmul.f32 %v2293_v56, %v2290_v48  ;;  %vm1161_vm2 = vmor %vm1159_vm1, %vm1160_vm0  ;;  %v1180_v26 = vand.u32 2147483648, %v1153_v58  ;;  %v1178_v53 = vand.u32 2147483647, %v1153_v58 }
 0x518   :  { %v1156_v17 = vsub.f32 1.0, %v1155_v2  ;;  %v2295_v23 = vadd.f32 1.0, %v1702_v59  ;;  %vm1174_vm5 = vweird.f32 %v1153_v58  ;;  %vm1200_vm6 = vweird.f32 %v2293_v56  ;;  %v1241_v2 = vld [vmem:[#allocation2 + $0x150] sm:$0xff] }
 0x519   :  { %v1196_v28 = vsub.f32 1.0, %v1195_v24  ;;  %v1181_v9 = vor.u32 1.1754944e-38, %v1180_v26  ;;  %vm1179_vm9 = vcmp.eq.f32.partialorder %v1178_v53, 8.507059e+37  ;;  %vm1201_vm11 = vmor %vm1199_vm8, %vm1200_vm6 }
 0x51a   :  { %v1157_v25 = vmul.f32 %v1698_v57, %v1156_v17  ;;  %1705 = vrcp.f32 %v2295_v23  ;;  %v1220_v47 = vand.u32 2147483648, %v2295_v23  ;;  %vm1214_vm12 = vweird.f32 %v2295_v23 }
 0x51b   :  { %v1197_v18 = vmul.f32 %v2293_v56, %v1196_v28  ;;  %v1218_v46 = vand.u32 2147483647, %v2295_v23  ;;  %v1245_v28 = vld [vmem:[#allocation2 + $0x170] sm:$0xff] }
 0x51c   :  { %v1158_v29 = vadd.f32 %v1698_v57, %v1157_v25  ;;  %v1221_v7 = vor.u32 1.1754944e-38, %v1220_v47 }
 0x51d   :  { %v1704_v1 = vpop.eup %1703  ;;  %v1198_v43 = vadd.f32 %v2293_v56, %v1197_v18  ;;  %vm1219_vm15 = vcmp.eq.f32.partialorder %v1218_v46, 8.507059e+37 }
 0x51e   :  { %v1162_v51 = vsel %vm1161_vm2, %v1698_v57, %v1158_v29  ;;  %v1170_v0 = vmul.f32 %v1704_v1, %v1153_v58  ;;  %vm1175_vm4 = vweird.f32 %v1704_v1 }
 0x51f   :  { %v1167_v14 = vsel %vm1164_vm3, %v1166_v34, %v1162_v51  ;;  %vm1176_vm7 = vmor %vm1174_vm5, %vm1175_vm4  ;;  %v1202_v50 = vsel %vm1201_vm11, %v2293_v56, %v1198_v43 }
 0x520   :  { %v1706_v16 = vpop.eup %1705  ;;  %v1226_v60 = vmul.f32 %v1224_v33, %v1167_v14  ;;  %v1171_v38 = vsub.f32 1.0, %v1170_v0  ;;  %v1207_v10 = vsel %vm1204_vm14, %v1206_v8, %v1202_v50 }
 0x521   :  { %v1210_v35 = vmul.f32 %v1706_v16, %v2295_v23  ;;  %vm1215_vm10 = vweird.f32 %v1706_v16  ;;  %v1232_v22 = vsub.f32 1.0, %v1207_v10  ;;  %v1236_v48 = vmul.f32 %v1207_v10, %v2284_v37  ;;  %v1242_v23 = vld [vmem:[#allocation2 + $0x158] sm:$0xff]  ;;  %v1244_v37 = vld [vmem:[#allocation2 + $0x168] sm:$0xff] }
 0x522   :  { %v1172_v44 = vmul.f32 %v1704_v1, %v1171_v38  ;;  %v1228_v15 = vadd.f32 %v1226_v60, %v1097_v42  ;;  %vm1216_vm13 = vmor %vm1214_vm12, %vm1215_vm10 }
 0x523   :  { %v1211_v52 = vsub.f32 1.0, %v1210_v35 }
 0x524   :  { %v1173_v5 = vadd.f32 %v1704_v1, %v1172_v44  ;;  %1707 = vtanh.f32 %v1228_v15 }
 0x525   :  { %v1212_v27 = vmul.f32 %v1706_v16, %v1211_v52 }
 0x526   :  { %v1177_v36 = vsel %vm1176_vm7, %v1704_v1, %v1173_v5 }
 0x527   :  { %v1182_v63 = vsel %vm1179_vm9, %v1181_v9, %v1177_v36  ;;  %v1213_v12 = vadd.f32 %v1706_v16, %v1212_v27 }
 0x528   :  { %v1227_v13 = vmul.f32 %v1225_v62, %v1182_v63 }
 0x529   :  { %v1217_v3 = vsel %vm1216_vm13, %v1706_v16, %v1213_v12 }
 0x52a   :  { %v1229_v21 = vadd.f32 %v1227_v13, %v1100_v6  ;;  %v1708_v11 = vpop.eup %1707  ;;  %v1222_v19 = vsel %vm1219_vm15, %v1221_v7, %v1217_v3  ;;  %v1243_v6 = vld [vmem:[#allocation2 + $0x160] sm:$0xff] }
 0x52b   :  { %v1233_v30 = vsub.f32 1.0, %v1222_v19  ;;  %v1234_v31 = vmul.f32 %v1708_v11, %v1232_v22  ;;  %v1237_v49 = vmul.f32 %v1222_v19, %v2286_v61 }
 0x52c   :  { %1709 = vtanh.f32 %v1229_v21 }
 0x52d   :  { %v2315_v57 = vadd.f32 %v1236_v48, %v1234_v31 }
 0x532   :  { %v1710_v39 = vpop.eup %1709 }
 0x533   :  { %v1235_v41 = vmul.f32 %v1710_v39, %v1233_v30 }
 0x535   :  { %v2317_v58 = vadd.f32 %v1237_v49, %v1235_v41 }
 0x537   :  { %v1247_v56 = vpack.c.bf16 %v2317_v58, %v2315_v57 }
 0x539   :  { %1256 = vmatmul.bf16.vlgmr.msrb.gmra.mxu1 %v1247_v56  ;;  %1270 = vmatmul.bf16.vlgmr.msrb.gmra.mxu2 %v1247_v56 }
 0x53a   :  { %1284 = vmatmul.bf16.vlgmr.msrb.gmra.mxu3 %v1247_v56 }
 0x5b6   :  { %v1257_v59 = vpop.f32.mrf.mxu1 }
 0x5b7   :  { %v1290_v4 = vadd.f32 %v1257_v59, %v1241_v2 }
 0x5b9   :  { %v1532_v17 = vmul.f32 -1.442695, %v1290_v4 }
 0x5bb   :  { %1711 = vpow2.f32 %v1532_v17  ;;  %v1246_v17 = vld [vmem:[#allocation2 + $0x178] sm:$0xff] }
 0x5bc   :  { %v1271_v45 = vpop.f32.mrf.mxu2 }
 0x5bd   :  { %v1330_v24 = vadd.f32 %v1271_v45, %v1242_v23  ;;  %v1285_v44 = vpop.f32.mrf.mxu3 }
 0x5be   :  { %v1259_v61 = vpop.f32.mrf.mxu1  ;;  %v1370_v63 = vadd.f32 %v2219_v55, %v1285_v44 }
 0x5bf   :  { %v1534_v25 = vmul.f32 -1.442695, %v1330_v24  ;;  %v1291_v20 = vadd.f32 %v1259_v61, %v1244_v37 }
 0x5c1   :  { %v1712_v29 = vpop.eup %1711  ;;  %1713 = vpow2.f32 %v1534_v25  ;;  %v1533_v1 = vmul.f32 -1.442695, %v1291_v20 }
 0x5c2   :  { %v1298_v34 = vadd.f32 1.0, %v1712_v29 }
 0x5c3   :  { %1715 = vpow2.f32 %v1533_v1 }
 0x5c4   :  { %1717 = vrcp.f32 %v1298_v34  ;;  %v1273_v33 = vpop.f32.mrf.mxu2  ;;  %v1311_v35 = vand.u32 2147483648, %v1298_v34  ;;  %v1309_v52 = vand.u32 2147483647, %v1298_v34  ;;  %vm1305_vm1 = vweird.f32 %v1298_v34 }
 0x5c5   :  { %v1331_v51 = vadd.f32 %v1273_v33, %v1245_v28  ;;  %v1287_v39 = vpop.f32.mrf.mxu3 }
 0x5c6   :  { %v1312_v27 = vor.u32 1.1754944e-38, %v1311_v35  ;;  %vm1310_vm3 = vcmp.eq.f32.partialorder %v1309_v52, 8.507059e+37  ;;  %v1371_v59 = vadd.f32 %v2219_v55, %v1287_v39 }
 0x5c7   :  { %v1714_v0 = vpop.eup %1713  ;;  %v1535_v14 = vmul.f32 -1.442695, %v1331_v51 }
 0x5c8   :  { %v1338_v16 = vadd.f32 1.0, %v1714_v0 }
 0x5c9   :  { %v1716_v60 = vpop.eup %1715  ;;  %1719 = vpow2.f32 %v1535_v14 }
 0x5ca   :  { %v1718_v38 = vpop.eup %1717  ;;  %1721 = vrcp.f32 %v1338_v16  ;;  %v1299_v54 = vadd.f32 1.0, %v1716_v60  ;;  %v1351_v47 = vand.u32 2147483648, %v1338_v16  ;;  %v1349_v46 = vand.u32 2147483647, %v1338_v16 }
 0x5cb   :  { %v1301_v18 = vmul.f32 %v1718_v38, %v1298_v34  ;;  %vm1306_vm0 = vweird.f32 %v1718_v38  ;;  %vm1345_vm5 = vweird.f32 %v1338_v16 }
 0x5cc   :  { %1723 = vrcp.f32 %v1299_v54  ;;  %vm1307_vm2 = vmor %vm1305_vm1, %vm1306_vm0  ;;  %v1326_v7 = vand.u32 2147483648, %v1299_v54  ;;  %v1324_v19 = vand.u32 2147483647, %v1299_v54  ;;  %v1352_v22 = vor.u32 1.1754944e-38, %v1351_v47 }
 0x5cd   :  { %v1302_v26 = vsub.f32 1.0, %v1301_v18  ;;  %vm1350_vm8 = vcmp.eq.f32.partialorder %v1349_v46, 8.507059e+37  ;;  %vm1320_vm9 = vweird.f32 %v1299_v54 }
 0x5ce   :  { %v1327_v56 = vor.u32 1.1754944e-38, %v1326_v7  ;;  %vm1325_vm11 = vcmp.eq.f32.partialorder %v1324_v19, 8.507059e+37 }
 0x5cf   :  { %v1720_v42 = vpop.eup %1719  ;;  %v1303_v53 = vmul.f32 %v1718_v38, %v1302_v26 }
 0x5d0   :  { %v1722_v62 = vpop.eup %1721  ;;  %v2321_v5 = vadd.f32 1.0, %v1720_v42 }
 0x5d1   :  { %v1341_v15 = vmul.f32 %v1722_v62, %v1338_v16  ;;  %v1304_v9 = vadd.f32 %v1718_v38, %v1303_v53  ;;  %vm1346_vm4 = vweird.f32 %v1722_v62 }
 0x5d2   :  { %1725 = vrcp.f32 %v2321_v5  ;;  %v1724_v43 = vpop.eup %1723  ;;  %vm1347_vm6 = vmor %vm1345_vm5, %vm1346_vm4  ;;  %v1366_v37 = vand.u32 2147483648, %v2321_v5  ;;  %vm1360_vm13 = vweird.f32 %v2321_v5  ;;  %v1364_v20 = vand.u32 2147483647, %v2321_v5 }
 0x5d3   :  { %v1342_v32 = vsub.f32 1.0, %v1341_v15  ;;  %v1308_v36 = vsel %vm1307_vm2, %v1718_v38, %v1304_v9  ;;  %v1316_v12 = vmul.f32 %v1724_v43, %v1299_v54  ;;  %vm1321_vm7 = vweird.f32 %v1724_v43 }
 0x5d4   :  { %v1313_v40 = vsel %vm1310_vm3, %v1312_v27, %v1308_v36  ;;  %vm1322_vm10 = vmor %vm1320_vm9, %vm1321_vm7  ;;  %v1367_v33 = vor.u32 1.1754944e-38, %v1366_v37  ;;  %vm1365_vm15 = vcmp.eq.f32.partialorder %v1364_v20, 8.507059e+37 }
 0x5d5   :  { %v1343_v13 = vmul.f32 %v1722_v62, %v1342_v32  ;;  %v1372_v50 = vmul.f32 %v1370_v63, %v1313_v40  ;;  %v1317_v8 = vsub.f32 1.0, %v1316_v12 }
 0x5d7   :  { %v1344_v21 = vadd.f32 %v1722_v62, %v1343_v13  ;;  %v1374_v3 = vadd.f32 %v1372_v50, %v1243_v6  ;;  %v1318_v11 = vmul.f32 %v1724_v43, %v1317_v8 }
 0x5d8   :  { %v1726_v10 = vpop.eup %1725 }
 0x5d9   :  { %v1348_v30 = vsel %vm1347_vm6, %v1722_v62, %v1344_v21  ;;  %1727 = vtanh.f32 %v1374_v3  ;;  %v1356_v31 = vmul.f32 %v1726_v10, %v2321_v5  ;;  %v1319_v41 = vadd.f32 %v1724_v43, %v1318_v11 }
 0x5da   :  { %v1353_v48 = vsel %vm1350_vm8, %v1352_v22, %v1348_v30  ;;  %vm1361_vm12 = vweird.f32 %v1726_v10 }
 0x5db   :  { %v1357_v49 = vsub.f32 1.0, %v1356_v31  ;;  %v1323_v2 = vsel %vm1322_vm10, %v1724_v43, %v1319_v41  ;;  %v1378_v45 = vsub.f32 1.0, %v1353_v48  ;;  %v1382_v1 = vmul.f32 %v1353_v48, %v2315_v57  ;;  %vm1362_vm14 = vmor %vm1360_vm13, %vm1361_vm12 }
 0x5dc   :  { %v1328_v23 = vsel %vm1325_vm11, %v1327_v56, %v1323_v2 }
 0x5dd   :  { %v1358_v4 = vmul.f32 %v1726_v10, %v1357_v49  ;;  %v1373_v24 = vmul.f32 %v1371_v59, %v1328_v23 }
 0x5df   :  { %v1728_v61 = vpop.eup %1727  ;;  %v1359_v25 = vadd.f32 %v1726_v10, %v1358_v4  ;;  %v1375_v34 = vadd.f32 %v1373_v24, %v1246_v17 }
 0x5e0   :  { %v1380_v29 = vmul.f32 %v1728_v61, %v1378_v45 }
 0x5e1   :  { %v1363_v55 = vsel %vm1362_vm14, %v1726_v10, %v1359_v25  ;;  %1729 = vtanh.f32 %v1375_v34 }
 0x5e2   :  { %v1384_v28 = vadd.f32 %v1382_v1, %v1380_v29  ;;  %v1368_v51 = vsel %vm1365_vm15, %v1367_v33, %v1363_v55 }
 0x5e3   :  { %v1379_v0 = vsub.f32 1.0, %v1368_v51  ;;  %v1383_v57 = vmul.f32 %v1368_v51, %v2317_v58 }
 0x5e4   :  { %1386 = vst [vmem:[#allocation7] sm:$0xff] %v1384_v28 }
 0x5e7   :  { %v1730_v14 = vpop.eup %1729 }
 0x5e8   :  { %v1381_v16 = vmul.f32 %v1730_v14, %v1379_v0 }
 0x5ea   :  { %v1385_v60 = vadd.f32 %v1383_v57, %v1381_v16 }
 0x5ec   :  { %1387 = vst [vmem:[#allocation7 + $0x8] sm:$0xff] %v1385_v60 }
 0x5ed   :  { %1400 = dma.vmem_to_hbm [thread:$0]  %s1393_s28, 256, %s1395_s4, [#allocation4], %s1818_s5, %s1818_s5, %s1819_s6  }
 0x5ee   :  { %1808 = dma.done.wait [#allocation4], 256  }
 0x5ef   :  { %1809 = vsyncadd [#allocation4], 4294967040 }
 0x5f0   :  { %1405 = vsyncpa [#allocation3], 1 }
 0x5f1   :  { %1406 = vsyncpa [#allocation6], 1 }
 0x5f2   :  { %1407 = vsyncpa [#allocation4], 1 }

</bundles_post_ra>
